<compile_context>
chip_gen: v7x
topology: tpu7x:2x2x1
jax: 0.10.0
libtpu: 0.0.40
codegen_flags: <defaults>
</compile_context>

<pallas_src>
import math
from functools import partial

import jax
import jax.numpy as jnp
from jax import lax
from jax.experimental import pallas as pl
from jax.experimental.pallas import tpu as pltpu


def _msa_kernel(num_heads, want_attn, *refs):
    if want_attn:
        (x_ref, nd_ref, db_ref, wqkv_ref, bqkv_ref, wf_ref,
         b1_ref, w2_ref, b2_ref, g_ref, beta_ref,
         out_ref, attn_ref,
         q_scr, k_scr, v_scr, h1_scr) = refs
    else:
        (x_ref, nd_ref, db_ref, wqkv_ref, bqkv_ref, wf_ref,
         b1_ref, w2_ref, b2_ref, g_ref, beta_ref,
         out_ref,
         q_scr, k_scr, v_scr, h1_scr) = refs
        attn_ref = None

    f32, bf16 = jnp.float32, jnp.bfloat16
    H = num_heads
    bt, N, D = x_ref.shape
    dk = D // H
    rows = bt * N
    Z = bt * H

    s = pl.program_id(1)
    n_s = pl.num_programs(1)

    # ---- once per batch block: fused QKV projection + head split ------------
    @pl.when(s == 0)
    def _prologue():
        x2 = x_ref[...].reshape(rows, D)                       # bf16
        qkv = jnp.dot(x2, wqkv_ref[...],
                      preferred_element_type=f32) + bqkv_ref[...]   # (rows, 3D)

        def heads(off):
            # static lane slices + major-axis stack; done once per batch block
            cols = [qkv[:, off + h * dk: off + (h + 1) * dk].reshape(bt, N, dk)
                    for h in range(H)]
            return jnp.stack(cols, axis=1).astype(bf16)        # (bt, H, N, dk)

        q_scr[...] = heads(0)            # 1/sqrt(d_k) already folded into wqkv
        k_scr[...] = heads(D)
        v_scr[...] = heads(2 * D)
        h1_scr[...] = jnp.zeros_like(h1_scr)

    # ---- per scale: distance-masked softmax attention + fused a_proj@W1 -----
    qs = q_scr[...].reshape(Z, N, dk)
    ks = k_scr[...].reshape(Z, N, dk)
    scores = jnp.einsum('znk,zmk->znm', qs, ks,
                        preferred_element_type=f32).reshape(bt, H, N, N)

    cut = db_ref[0]                                            # (bt, 1, 1)
    rr = lax.broadcasted_iota(jnp.int32, (N, N), 0)
    cc = lax.broadcasted_iota(jnp.int32, (N, N), 1)
    # row/col 0 forced visible (matches torch dist_mask[:, :, 0, :] = 1 etc.)
    visible = (nd_ref[...] < cut) | ((rr == 0) | (cc == 0))[None]   # (bt, N, N)

    masked = jnp.where(visible[:, None], scores, jnp.float32(-1e12))
    m = jnp.max(masked, axis=-1, keepdims=True)
    e = jnp.exp(masked - m)
    denom = jnp.sum(e, axis=-1, keepdims=True)
    attn = (e * pl.reciprocal(denom, approx=True)).astype(bf16)     # one cast

    if want_attn:
        attn_ref[...] = attn                 # one (bt, H, N, N) slab per scale

    ctx = jnp.einsum('znm,zmk->znk', attn.reshape(Z, N, N),
                     v_scr[...].reshape(Z, N, dk),
                     preferred_element_type=f32)               # (Z, N, dk) f32
    ctx = ctx.astype(bf16).reshape(bt, H, N, dk)
    cat = jnp.concatenate(
        [ctx[:, h].reshape(rows, dk) for h in range(H)], axis=-1)   # (rows, D)
    # fused a_proj[s] @ scale_linear.W1[s]
    h1_scr[...] += jnp.dot(cat, wf_ref[0], preferred_element_type=f32)

    # ---- once per batch block: SiLU -> W2 -> residual -> LayerNorm ----------
    @pl.when(s == n_s - 1)
    def _epilogue():
        h1 = h1_scr[...] + b1_ref[...]
        act = h1 * jax.nn.sigmoid(h1)                          # SiLU in f32
        h2 = jnp.dot(act.astype(bf16), w2_ref[...],
                     preferred_element_type=f32) + b2_ref[...]
        res = h2 + x_ref[...].reshape(rows, D).astype(f32)     # residual
        mu = jnp.mean(res, axis=-1, keepdims=True)
        var = jnp.mean((res - mu) ** 2, axis=-1, keepdims=True)
        out = (res - mu) * lax.rsqrt(var + 1e-6) * g_ref[...] + beta_ref[...]
        out_ref[...] = out.reshape(bt, N, D).astype(out_ref.dtype)


def _pick_block_b(B, N, target_rows=256):
    """Largest divisor of B with bt*N <= target_rows, preferring >= 2 batch
    blocks so the 'parallel' grid axis can shard across v7x's two TensorCores.
    (Raise target_rows to ~512 on v6e when the VMEM budget allows.)"""
    cap = max(1, target_rows // max(N, 1))
    divs = [c for c in range(1, B + 1) if B % c == 0 and c <= cap]
    if not divs:
        return 1
    multi = [c for c in divs if B // c >= 2]
    return max(multi) if multi else max(divs)


def _nbytes(shape, itemsize):
    n = 1
    for d in shape:
        n *= d
    return n * itemsize


def multi_scale_attention(x, dist, dist_bar, params, num_heads,
                          use_super_node=True, block_b=None, return_attn=True):
    B, N, D = x.shape
    S = dist_bar.shape[-1]
    H = num_heads
    assert D % H == 0
    dk = D // H
    sn = int(use_super_node)
    Nd = N - sn
    assert dist.shape == (B, Nd, Nd)

    bt = _pick_block_b(B, N) if block_b is None else block_b
    assert B % bt == 0
    rows = bt * N

    f32, bf16 = jnp.float32, jnp.bfloat16

    # --- host-side one-time parameter transforms ------------------------------
    scale = 1.0 / math.sqrt(dk)
    wqkv = jnp.concatenate([params['wq'] * scale, params['wk'], params['wv']],
                           axis=1).astype(bf16)                       # (D, 3D)
    bqkv = jnp.concatenate([params['bq'] * scale, params['bk'], params['bv']],
                           axis=1).astype(f32)                        # (1, 3D)
    # W_f[s] = wa[s] @ w1[s] composed in f32, then cast; bias folded likewise.
    wf = jnp.einsum('sij,sjk->sik', params['wa'].astype(f32),
                    params['w1'].astype(f32)).astype(bf16)            # (S, D, D)
    b1e = (params['b1'].astype(f32) +
           jnp.einsum('sj,sjk->k', params['ba'].astype(f32),
                      params['w1'].astype(f32))[None, :])             # (1, D)
    w2 = params['w2'].astype(bf16)
    b2 = params['b2'].astype(f32)
    gamma = params['gamma'].astype(f32)
    beta = params['beta'].astype(f32)

    # dist embedded once into the (N, N) frame (fill value irrelevant: super
    # row/col are forced visible in the kernel) — no in-kernel lane shift.
    ndist = jnp.ones((B, N, N), f32).at[:, sn:, sn:].set(dist.astype(f32))
    db = dist_bar.astype(f32).T.reshape(S, B, 1, 1)
    x_b = x.astype(bf16)

    kernel = partial(_msa_kernel, H, return_attn)

    def const_spec(shape):
        n = len(shape)
        return pl.BlockSpec(shape, lambda g, s, n=n: (0,) * n)

    in_specs = [
        pl.BlockSpec((bt, N, D), lambda g, s: (g, 0, 0)),          # x
        pl.BlockSpec((bt, N, N), lambda g, s: (g, 0, 0)),          # ndist
        pl.BlockSpec((1, bt, 1, 1), lambda g, s: (s, g, 0, 0)),    # dist cutoff
        const_spec(wqkv.shape), const_spec(bqkv.shape),
        pl.BlockSpec((1, D, D), lambda g, s: (s, 0, 0)),           # fused wa@w1
        const_spec(b1e.shape), const_spec(w2.shape), const_spec(b2.shape),
        const_spec(gamma.shape), const_spec(beta.shape),
    ]

    out_spec_x = pl.BlockSpec((bt, N, D), lambda g, s: (g, 0, 0))
    out_shape_x = jax.ShapeDtypeStruct((B, N, D), f32)
    if return_attn:
        out_specs = (out_spec_x,
                     pl.BlockSpec((bt, H, N, N), lambda g, s: (g, s, 0, 0)))
        out_shape = (out_shape_x,
                     jax.ShapeDtypeStruct((B, S * H, N, N), bf16))
    else:
        out_specs = out_spec_x
        out_shape = out_shape_x

    scratch_shapes = [
        pltpu.VMEM((bt, H, N, dk), bf16),   # q (pre-scaled), head-major cache
        pltpu.VMEM((bt, H, N, dk), bf16),   # k
        pltpu.VMEM((bt, H, N, dk), bf16),   # v
        pltpu.VMEM((rows, D), f32),         # h1 accumulator over scales
    ]

    # explicit VMEM budget: every in/out block is double-buffered by default
    # (including the constant weight blocks — pl.Buffered(1) could single-
    # buffer them); add headroom, clamp to stay under physical VMEM.
    blk = (_nbytes((bt, N, D), 2) + _nbytes((bt, N, N), 4)
           + _nbytes((1, bt, 1, 1), 4)
           + _nbytes(wqkv.shape, 2) + _nbytes(bqkv.shape, 4)
           + _nbytes((1, D, D), 2) + _nbytes(b1e.shape, 4)
           + _nbytes(w2.shape, 2) + _nbytes(b2.shape, 4)
           + _nbytes(gamma.shape, 4) + _nbytes(beta.shape, 4)
           + _nbytes((bt, N, D), 4)
           + (_nbytes((bt, H, N, N), 2) if return_attn else 0))
    scratch_bytes = 3 * _nbytes((bt, H, N, dk), 2) + _nbytes((rows, D), 4)
    vmem_limit = int(min(max(2 * blk + scratch_bytes + (4 << 20), 32 << 20),
                         100 << 20))   # re-budget on v7x (64 MiB physical)

    res = pl.pallas_call(
        kernel,
        out_shape=out_shape,
        grid_spec=pltpu.PrefetchScalarGridSpec(
            num_scalar_prefetch=0,
            grid=(B // bt, S),
            in_specs=in_specs,
            out_specs=out_specs,
            scratch_shapes=scratch_shapes),
        compiler_params=pltpu.CompilerParams(
            dimension_semantics=("parallel", "arbitrary"),
            vmem_limit_bytes=vmem_limit),
    )(x_b, ndist, db, wqkv, bqkv, wf, b1e, w2, b2, gamma, beta)

    if return_attn:
        out, attn = res
        attn_r = attn.reshape(B, S, H, N, N)
        return out, [attn_r[:, i] for i in range(S)]   # bf16 attention maps
    return res, None


def reference(x, dist, dist_bar, params, num_heads, use_super_node=True):
    """Pure-JAX f32 replica of the torch forward (eval mode) for verification."""
    B, N, D = x.shape
    S = dist_bar.shape[-1]
    d_k = D // num_heads
    sn = int(use_super_node)

    q = x @ params['wq'] + params['bq'][0]
    k = x @ params['wk'] + params['bk'][0]
    v = x @ params['wv'] + params['bv'][0]

    def split(t):
        return t.reshape(B, N, num_heads, d_k).transpose(0, 2, 1, 3)

    q, k, v = split(q), split(k), split(v)
    scores = jnp.einsum('bhnd,bhmd->bhnm', q, k) / math.sqrt(d_k)

    new_dist = jnp.ones((B, N, N), x.dtype).at[:, sn:, sn:].set(dist)
    row = jnp.arange(N)[:, None]
    col = jnp.arange(N)[None, :]
    super_mask = (row == 0) | (col == 0)

    feats, attns = [], []
    for s in range(S):
        cut = dist_bar[:, s][:, None, None]
        dmask = (new_dist < cut) | super_mask
        sm = jnp.where(dmask[:, None], scores, -1e12)
        attn = jax.nn.softmax(sm, axis=-1)
        attns.append(attn)
        out = jnp.einsum('bhnm,bhmd->bhnd', attn, v)
        out = out.transpose(0, 2, 1, 3).reshape(B, N, D)
        feats.append(out @ params['wa'][s] + params['ba'][s])

    h1 = sum(feats[s] @ params['w1'][s] for s in range(S)) + params['b1'][0]
    silu = h1 * jax.nn.sigmoid(h1)
    h2 = silu @ params['w2'] + params['b2'][0]
    res = h2 + x
    mu = res.mean(-1, keepdims=True)
    var = ((res - mu) ** 2).mean(-1, keepdims=True)
    out = (res - mu) / jnp.sqrt(var + 1e-6) * params['gamma'][0] + params['beta'][0]
    return out, attns


def init_params(key, hidden_dim, num_scales):
    D, S = hidden_dim, num_scales
    keys = jax.random.split(key, 16)
    s = 0.1
    return {
        'wq': jax.random.normal(keys[0], (D, D), jnp.float32) * s,
        'bq': jax.random.normal(keys[1], (1, D), jnp.float32) * s,
        'wk': jax.random.normal(keys[2], (D, D), jnp.float32) * s,
        'bk': jax.random.normal(keys[3], (1, D), jnp.float32) * s,
        'wv': jax.random.normal(keys[4], (D, D), jnp.float32) * s,
        'bv': jax.random.normal(keys[5], (1, D), jnp.float32) * s,
        'wa': jax.random.normal(keys[6], (S, D, D), jnp.float32) * s,
        'ba': jax.random.normal(keys[7], (S, D), jnp.float32) * s,
        # scale_linear[0]: Linear(S*D -> D), stored as (S, D, D) slices of the
        # (S*D, D) weight so the concat-over-scales matmul becomes a sum.
        'w1': jax.random.normal(keys[8], (S, D, D), jnp.float32) * s,
        'b1': jax.random.normal(keys[9], (1, D), jnp.float32) * s,
        'w2': jax.random.normal(keys[10], (D, D), jnp.float32) * s,
        'b2': jax.random.normal(keys[11], (1, D), jnp.float32) * s,
        'gamma': jnp.ones((1, D), jnp.float32),
        'beta': jnp.zeros((1, D), jnp.float32),
    }


if __name__ == "__main__":
    B, N, D, H, S = 2, 8, 32, 4, 3   # N includes the super node; dist is (B, N-1, N-1)

    key = jax.random.PRNGKey(0)
    kx, kd, kp = jax.random.split(key, 3)
    x = jax.random.normal(kx, (B, N, D), jnp.float32)
    dist = jax.random.uniform(kd, (B, N - 1, N - 1), jnp.float32) * 4.0
    dist_bar = jnp.array([[1.0, 2.0, 3.0],
                          [1.5, 2.5, 3.5]], jnp.float32)      # (B, S)
    params = init_params(kp, D, S)

    out, attn_list = multi_scale_attention(x, dist, dist_bar, params, num_heads=H)
    out = jax.block_until_ready(out)
    attn_list = [jax.block_until_ready(a) for a in attn_list]

    ref_out, ref_attn = reference(x, dist, dist_bar, params, num_heads=H)
    # bf16 MXU operands + bf16 attn storage + approx reciprocal -> relaxed tols.
    assert jnp.allclose(out, ref_out, atol=6e-2, rtol=6e-2), "output mismatch"
    for a, ra in zip(attn_list, ref_attn):
        assert jnp.allclose(a.astype(jnp.float32), ra, atol=3e-2, rtol=5e-2), \
            "attn mismatch"

    print("KERNEL_OK")
</pallas_src>

<mosaic_0001>
module attributes {stable_mosaic.version = 11 : i64} {
  func.func @_msa_kernel(%arg0: i32, %arg1: i32, %arg2: memref<1x8x32xbf16, #tpu.memory_space<vmem>>, %arg3: memref<1x8x8xf32, #tpu.memory_space<vmem>>, %arg4: memref<1x1x1x1xf32, #tpu.memory_space<vmem>>, %arg5: memref<32x96xbf16, #tpu.memory_space<vmem>>, %arg6: memref<1x96xf32, #tpu.memory_space<vmem>>, %arg7: memref<1x32x32xbf16, #tpu.memory_space<vmem>>, %arg8: memref<1x32xf32, #tpu.memory_space<vmem>>, %arg9: memref<32x32xbf16, #tpu.memory_space<vmem>>, %arg10: memref<1x32xf32, #tpu.memory_space<vmem>>, %arg11: memref<1x32xf32, #tpu.memory_space<vmem>>, %arg12: memref<1x32xf32, #tpu.memory_space<vmem>>, %arg13: memref<1x8x32xf32, #tpu.memory_space<vmem>>, %arg14: memref<1x4x8x8xbf16, #tpu.memory_space<vmem>>, %arg15: memref<1x4x8x8xbf16, #tpu.memory_space<vmem>>, %arg16: memref<1x4x8x8xbf16, #tpu.memory_space<vmem>>, %arg17: memref<1x4x8x8xbf16, #tpu.memory_space<vmem>>, %arg18: memref<8x32xf32, #tpu.memory_space<vmem>>) attributes {dimension_semantics = [#tpu.dimension_semantics<parallel>, #tpu.dimension_semantics<arbitrary>], iteration_bounds = array<i64: 2, 3>, scalar_prefetch = 0 : i64, scratch_operands = 4 : i64, tpu.core_type = #tpu.core_type<tc>, window_params = [{transform_indices = @transform_0, window_bounds = array<i64: 1, 8, 32>}, {transform_indices = @transform_1, window_bounds = array<i64: 1, 8, 8>}, {transform_indices = @transform_2, window_bounds = array<i64: 1, 1, 1, 1>}, {pipeline_mode = #tpu.pipeline_mode<synchronous>, transform_indices = @transform_3, window_bounds = array<i64: 32, 96>}, {pipeline_mode = #tpu.pipeline_mode<synchronous>, transform_indices = @transform_4, window_bounds = array<i64: 1, 96>}, {transform_indices = @transform_5, window_bounds = array<i64: 1, 32, 32>}, {pipeline_mode = #tpu.pipeline_mode<synchronous>, transform_indices = @transform_6, window_bounds = array<i64: 1, 32>}, {pipeline_mode = #tpu.pipeline_mode<synchronous>, transform_indices = @transform_7, window_bounds = array<i64: 32, 32>}, {pipeline_mode = #tpu.pipeline_mode<synchronous>, transform_indices = @transform_8, window_bounds = array<i64: 1, 32>}, {pipeline_mode = #tpu.pipeline_mode<synchronous>, transform_indices = @transform_9, window_bounds = array<i64: 1, 32>}, {pipeline_mode = #tpu.pipeline_mode<synchronous>, transform_indices = @transform_10, window_bounds = array<i64: 1, 32>}, {transform_indices = @transform_11, window_bounds = array<i64: 1, 8, 32>}, {transform_indices = @transform_12, window_bounds = array<i64: 1, 4, 8, 8>}]} {
    %c0_i32 = arith.constant 0 : i32
    %0 = arith.cmpi eq, %arg1, %c0_i32 : i32
    %1 = arith.extui %0 : i1 to i32
    %c0_i32_0 = arith.constant 0 : i32
    %2 = arith.cmpi ne, %1, %c0_i32_0 : i32
    scf.if %2 {
      %c0_38 = arith.constant 0 : index
      %c0_39 = arith.constant 0 : index
      %c0_40 = arith.constant 0 : index
      %68 = vector.load %arg2[%c0_38, %c0_39, %c0_40] : memref<1x8x32xbf16, #tpu.memory_space<vmem>>, vector<1x8x32xbf16>
      %69 = vector.shape_cast %68 : vector<1x8x32xbf16> to vector<8x32xbf16>
      %c0_41 = arith.constant 0 : index
      %c0_42 = arith.constant 0 : index
      %70 = vector.load %arg5[%c0_41, %c0_42] : memref<32x96xbf16, #tpu.memory_space<vmem>>, vector<32x96xbf16>
      %cst_43 = arith.constant dense<0.000000e+00> : vector<8x96xf32>
      %71 = tpu.matmul %69, %70, %cst_43 {dimension_numbers = #tpu.dot_dimension_numbers<[1], [0], [0], [1], [0, 0, 1, 1], [], []>} : vector<8x32xbf16>, vector<32x96xbf16>, vector<8x96xf32> -> vector<8x96xf32>
      %c0_44 = arith.constant 0 : index
      %c0_45 = arith.constant 0 : index
      %72 = vector.load %arg6[%c0_44, %c0_45] : memref<1x96xf32, #tpu.memory_space<vmem>>, vector<1x96xf32>
      %73 = vector.broadcast %72 : vector<1x96xf32> to vector<8x96xf32>
      %74 = arith.addf %71, %73 : vector<8x96xf32>
      %75 = vector.extract_strided_slice %74 {offsets = [0, 0], sizes = [8, 8], strides = [1, 1]} : vector<8x96xf32> to vector<8x8xf32>
      %76 = vector.shape_cast %75 : vector<8x8xf32> to vector<1x8x8xf32>
      %77 = vector.extract_strided_slice %74 {offsets = [0, 8], sizes = [8, 8], strides = [1, 1]} : vector<8x96xf32> to vector<8x8xf32>
      %78 = vector.shape_cast %77 : vector<8x8xf32> to vector<1x8x8xf32>
      %79 = vector.extract_strided_slice %74 {offsets = [0, 16], sizes = [8, 8], strides = [1, 1]} : vector<8x96xf32> to vector<8x8xf32>
      %80 = vector.shape_cast %79 : vector<8x8xf32> to vector<1x8x8xf32>
      %81 = vector.extract_strided_slice %74 {offsets = [0, 24], sizes = [8, 8], strides = [1, 1]} : vector<8x96xf32> to vector<8x8xf32>
      %82 = vector.shape_cast %81 : vector<8x8xf32> to vector<1x8x8xf32>
      %83 = vector.shape_cast %76 : vector<1x8x8xf32> to vector<1x1x8x8xf32>
      %84 = vector.shape_cast %78 : vector<1x8x8xf32> to vector<1x1x8x8xf32>
      %85 = vector.shape_cast %80 : vector<1x8x8xf32> to vector<1x1x8x8xf32>
      %86 = vector.shape_cast %82 : vector<1x8x8xf32> to vector<1x1x8x8xf32>
      %87 = tpu.concatenate %83, %84, %85, %86 in 1 : vector<1x1x8x8xf32>, vector<1x1x8x8xf32>, vector<1x1x8x8xf32>, vector<1x1x8x8xf32> -> vector<1x4x8x8xf32>
      %88 = arith.truncf %87 : vector<1x4x8x8xf32> to vector<1x4x8x8xbf16>
      %c0_46 = arith.constant 0 : index
      %c0_47 = arith.constant 0 : index
      %c0_48 = arith.constant 0 : index
      %c0_49 = arith.constant 0 : index
      %89 = vector.load %arg15[%c0_46, %c0_47, %c0_48, %c0_49] : memref<1x4x8x8xbf16, #tpu.memory_space<vmem>>, vector<1x4x8x8xbf16>
      tpu.vector_store %arg15[%c0_46, %c0_47, %c0_48, %c0_49], %88 {strides = array<i32>} : memref<1x4x8x8xbf16, #tpu.memory_space<vmem>>, vector<1x4x8x8xbf16>,
      %90 = vector.extract_strided_slice %74 {offsets = [0, 32], sizes = [8, 8], strides = [1, 1]} : vector<8x96xf32> to vector<8x8xf32>
      %91 = vector.shape_cast %90 : vector<8x8xf32> to vector<1x8x8xf32>
      %92 = vector.extract_strided_slice %74 {offsets = [0, 40], sizes = [8, 8], strides = [1, 1]} : vector<8x96xf32> to vector<8x8xf32>
      %93 = vector.shape_cast %92 : vector<8x8xf32> to vector<1x8x8xf32>
      %94 = vector.extract_strided_slice %74 {offsets = [0, 48], sizes = [8, 8], strides = [1, 1]} : vector<8x96xf32> to vector<8x8xf32>
      %95 = vector.shape_cast %94 : vector<8x8xf32> to vector<1x8x8xf32>
      %96 = vector.extract_strided_slice %74 {offsets = [0, 56], sizes = [8, 8], strides = [1, 1]} : vector<8x96xf32> to vector<8x8xf32>
      %97 = vector.shape_cast %96 : vector<8x8xf32> to vector<1x8x8xf32>
      %98 = vector.shape_cast %91 : vector<1x8x8xf32> to vector<1x1x8x8xf32>
      %99 = vector.shape_cast %93 : vector<1x8x8xf32> to vector<1x1x8x8xf32>
      %100 = vector.shape_cast %95 : vector<1x8x8xf32> to vector<1x1x8x8xf32>
      %101 = vector.shape_cast %97 : vector<1x8x8xf32> to vector<1x1x8x8xf32>
      %102 = tpu.concatenate %98, %99, %100, %101 in 1 : vector<1x1x8x8xf32>, vector<1x1x8x8xf32>, vector<1x1x8x8xf32>, vector<1x1x8x8xf32> -> vector<1x4x8x8xf32>
      %103 = arith.truncf %102 : vector<1x4x8x8xf32> to vector<1x4x8x8xbf16>
      %c0_50 = arith.constant 0 : index
      %c0_51 = arith.constant 0 : index
      %c0_52 = arith.constant 0 : index
      %c0_53 = arith.constant 0 : index
      %104 = vector.load %arg16[%c0_50, %c0_51, %c0_52, %c0_53] : memref<1x4x8x8xbf16, #tpu.memory_space<vmem>>, vector<1x4x8x8xbf16>
      tpu.vector_store %arg16[%c0_50, %c0_51, %c0_52, %c0_53], %103 {strides = array<i32>} : memref<1x4x8x8xbf16, #tpu.memory_space<vmem>>, vector<1x4x8x8xbf16>,
      %105 = vector.extract_strided_slice %74 {offsets = [0, 64], sizes = [8, 8], strides = [1, 1]} : vector<8x96xf32> to vector<8x8xf32>
      %106 = vector.shape_cast %105 : vector<8x8xf32> to vector<1x8x8xf32>
      %107 = vector.extract_strided_slice %74 {offsets = [0, 72], sizes = [8, 8], strides = [1, 1]} : vector<8x96xf32> to vector<8x8xf32>
      %108 = vector.shape_cast %107 : vector<8x8xf32> to vector<1x8x8xf32>
      %109 = vector.extract_strided_slice %74 {offsets = [0, 80], sizes = [8, 8], strides = [1, 1]} : vector<8x96xf32> to vector<8x8xf32>
      %110 = vector.shape_cast %109 : vector<8x8xf32> to vector<1x8x8xf32>
      %111 = vector.extract_strided_slice %74 {offsets = [0, 88], sizes = [8, 8], strides = [1, 1]} : vector<8x96xf32> to vector<8x8xf32>
      %112 = vector.shape_cast %111 : vector<8x8xf32> to vector<1x8x8xf32>
      %113 = vector.shape_cast %106 : vector<1x8x8xf32> to vector<1x1x8x8xf32>
      %114 = vector.shape_cast %108 : vector<1x8x8xf32> to vector<1x1x8x8xf32>
      %115 = vector.shape_cast %110 : vector<1x8x8xf32> to vector<1x1x8x8xf32>
      %116 = vector.shape_cast %112 : vector<1x8x8xf32> to vector<1x1x8x8xf32>
      %117 = tpu.concatenate %113, %114, %115, %116 in 1 : vector<1x1x8x8xf32>, vector<1x1x8x8xf32>, vector<1x1x8x8xf32>, vector<1x1x8x8xf32> -> vector<1x4x8x8xf32>
      %118 = arith.truncf %117 : vector<1x4x8x8xf32> to vector<1x4x8x8xbf16>
      %c0_54 = arith.constant 0 : index
      %c0_55 = arith.constant 0 : index
      %c0_56 = arith.constant 0 : index
      %c0_57 = arith.constant 0 : index
      %119 = vector.load %arg17[%c0_54, %c0_55, %c0_56, %c0_57] : memref<1x4x8x8xbf16, #tpu.memory_space<vmem>>, vector<1x4x8x8xbf16>
      tpu.vector_store %arg17[%c0_54, %c0_55, %c0_56, %c0_57], %118 {strides = array<i32>} : memref<1x4x8x8xbf16, #tpu.memory_space<vmem>>, vector<1x4x8x8xbf16>,
      %cst_58 = arith.constant 0.000000e+00 : f32
      %120 = vector.broadcast %cst_58 : f32 to vector<8x32xf32>
      %c0_59 = arith.constant 0 : index
      %c0_60 = arith.constant 0 : index
      %121 = vector.load %arg18[%c0_59, %c0_60] : memref<8x32xf32, #tpu.memory_space<vmem>>, vector<8x32xf32>
      tpu.vector_store %arg18[%c0_59, %c0_60], %120 {strides = array<i32>} : memref<8x32xf32, #tpu.memory_space<vmem>>, vector<8x32xf32>,
    } else {
    }
    %c0 = arith.constant 0 : index
    %c0_1 = arith.constant 0 : index
    %c0_2 = arith.constant 0 : index
    %c0_3 = arith.constant 0 : index
    %3 = vector.load %arg15[%c0, %c0_1, %c0_2, %c0_3] : memref<1x4x8x8xbf16, #tpu.memory_space<vmem>>, vector<1x4x8x8xbf16>
    %4 = vector.shape_cast %3 : vector<1x4x8x8xbf16> to vector<4x8x8xbf16>
    %c0_4 = arith.constant 0 : index
    %c0_5 = arith.constant 0 : index
    %c0_6 = arith.constant 0 : index
    %c0_7 = arith.constant 0 : index
    %5 = vector.load %arg16[%c0_4, %c0_5, %c0_6, %c0_7] : memref<1x4x8x8xbf16, #tpu.memory_space<vmem>>, vector<1x4x8x8xbf16>
    %6 = vector.shape_cast %5 : vector<1x4x8x8xbf16> to vector<4x8x8xbf16>
    "tpu.trace_start"() <{level = 10 : i32, message = "znk,zmk->znm"}> : () -> ()
    %cst = arith.constant dense<0.000000e+00> : vector<4x8x8xf32>
    %7 = tpu.matmul %4, %6, %cst {dimension_numbers = #tpu.dot_dimension_numbers<[2], [2], [1], [1], [0, 0, 0, 1, 1, 1], [0], [0]>} : vector<4x8x8xbf16>, vector<4x8x8xbf16>, vector<4x8x8xf32> -> vector<4x8x8xf32>
    "tpu.trace_stop"() : () -> ()
    %8 = vector.shape_cast %7 : vector<4x8x8xf32> to vector<1x4x8x8xf32>
    %c0_8 = arith.constant 0 : index
    %c0_9 = arith.constant 0 : index
    %c0_10 = arith.constant 0 : index
    %c0_11 = arith.constant 0 : index
    %9 = vector.load %arg4[%c0_8, %c0_9, %c0_10, %c0_11] : memref<1x1x1x1xf32, #tpu.memory_space<vmem>>, vector<1x1x1x1xf32>
    %10 = vector.shape_cast %9 : vector<1x1x1x1xf32> to vector<1x1x1xf32>
    %11 = tpu.iota {dimensions = array<i32: 0>} : vector<8x8xi32>
    %12 = tpu.iota {dimensions = array<i32: 1>} : vector<8x8xi32>
    %c0_12 = arith.constant 0 : index
    %c0_13 = arith.constant 0 : index
    %c0_14 = arith.constant 0 : index
    %13 = vector.load %arg3[%c0_12, %c0_13, %c0_14] : memref<1x8x8xf32, #tpu.memory_space<vmem>>, vector<1x8x8xf32>
    %14 = vector.broadcast %10 : vector<1x1x1xf32> to vector<1x8x8xf32>
    %15 = arith.cmpf olt, %13, %14 : vector<1x8x8xf32>
    %c0_i32_15 = arith.constant 0 : i32
    %16 = vector.broadcast %c0_i32_15 : i32 to vector<8x8xi32>
    %17 = arith.cmpi eq, %11, %16 : vector<8x8xi32>
    %c0_i32_16 = arith.constant 0 : i32
    %18 = vector.broadcast %c0_i32_16 : i32 to vector<8x8xi32>
    %19 = arith.cmpi eq, %12, %18 : vector<8x8xi32>
    %20 = arith.ori %17, %19 : vector<8x8xi1>
    %21 = vector.shape_cast %20 : vector<8x8xi1> to vector<1x8x8xi1>
    %22 = arith.ori %15, %21 : vector<1x8x8xi1>
    %23 = vector.shape_cast %22 : vector<1x8x8xi1> to vector<1x1x8x8xi1>
    %cst_17 = arith.constant -9.99999995E+11 : f32
    %24 = vector.shape_cast %23 : vector<1x1x8x8xi1> to vector<1x1x8x8xi1>
    %25 = vector.broadcast %24 : vector<1x1x8x8xi1> to vector<1x4x8x8xi1>
    %26 = vector.broadcast %cst_17 : f32 to vector<1x4x8x8xf32>
    %27 = arith.select %25, %8, %26 : vector<1x4x8x8xi1>, vector<1x4x8x8xf32>
    %cst_18 = arith.constant dense<0xFF800000> : vector<1x4x8xf32>
    %28 = vector.multi_reduction <maximumf>, %27, %cst_18 [3] : vector<1x4x8x8xf32> to vector<1x4x8xf32>
    %29 = vector.shape_cast %28 : vector<1x4x8xf32> to vector<1x4x8x1xf32>
    %30 = vector.broadcast %29 : vector<1x4x8x1xf32> to vector<1x4x8x8xf32>
    %31 = arith.subf %27, %30 : vector<1x4x8x8xf32>
    %32 = math.exp %31 : vector<1x4x8x8xf32>
    %cst_19 = arith.constant dense<0.000000e+00> : vector<1x4x8xf32>
    %33 = vector.multi_reduction <add>, %32, %cst_19 [3] : vector<1x4x8x8xf32> to vector<1x4x8xf32>
    %34 = vector.shape_cast %33 : vector<1x4x8xf32> to vector<1x4x8x1xf32>
    %35 = tpu.reciprocal %34 {approx = true} : vector<1x4x8x1xf32> -> vector<1x4x8x1xf32>
    %36 = vector.broadcast %35 : vector<1x4x8x1xf32> to vector<1x4x8x8xf32>
    %37 = arith.mulf %32, %36 : vector<1x4x8x8xf32>
    %38 = arith.truncf %37 : vector<1x4x8x8xf32> to vector<1x4x8x8xbf16>
    %c0_20 = arith.constant 0 : index
    %c0_21 = arith.constant 0 : index
    %c0_22 = arith.constant 0 : index
    %c0_23 = arith.constant 0 : index
    %39 = vector.load %arg14[%c0_20, %c0_21, %c0_22, %c0_23] : memref<1x4x8x8xbf16, #tpu.memory_space<vmem>>, vector<1x4x8x8xbf16>
    tpu.vector_store %arg14[%c0_20, %c0_21, %c0_22, %c0_23], %38 {strides = array<i32>} : memref<1x4x8x8xbf16, #tpu.memory_space<vmem>>, vector<1x4x8x8xbf16>,
    %40 = vector.shape_cast %38 : vector<1x4x8x8xbf16> to vector<4x8x8xbf16>
    %c0_24 = arith.constant 0 : index
    %c0_25 = arith.constant 0 : index
    %c0_26 = arith.constant 0 : index
    %c0_27 = arith.constant 0 : index
    %41 = vector.load %arg17[%c0_24, %c0_25, %c0_26, %c0_27] : memref<1x4x8x8xbf16, #tpu.memory_space<vmem>>, vector<1x4x8x8xbf16>
    %42 = vector.shape_cast %41 : vector<1x4x8x8xbf16> to vector<4x8x8xbf16>
    "tpu.trace_start"() <{level = 10 : i32, message = "znm,zmk->znk"}> : () -> ()
    %cst_28 = arith.constant dense<0.000000e+00> : vector<4x8x8xf32>
    %43 = tpu.matmul %40, %42, %cst_28 {dimension_numbers = #tpu.dot_dimension_numbers<[2], [1], [1], [2], [0, 0, 0, 1, 1, 2], [0], [0]>} : vector<4x8x8xbf16>, vector<4x8x8xbf16>, vector<4x8x8xf32> -> vector<4x8x8xf32>
    "tpu.trace_stop"() : () -> ()
    %44 = arith.truncf %43 : vector<4x8x8xf32> to vector<4x8x8xbf16>
    %45 = vector.shape_cast %44 : vector<4x8x8xbf16> to vector<1x4x8x8xbf16>
    %46 = vector.extract_strided_slice %45 {offsets = [0, 0, 0, 0], sizes = [1, 1, 8, 8], strides = [1, 1, 1, 1]} : vector<1x4x8x8xbf16> to vector<1x1x8x8xbf16>
    %47 = vector.shape_cast %46 : vector<1x1x8x8xbf16> to vector<1x8x8xbf16>
    %48 = vector.shape_cast %47 : vector<1x8x8xbf16> to vector<8x8xbf16>
    %49 = vector.extract_strided_slice %45 {offsets = [0, 1, 0, 0], sizes = [1, 1, 8, 8], strides = [1, 1, 1, 1]} : vector<1x4x8x8xbf16> to vector<1x1x8x8xbf16>
    %50 = vector.shape_cast %49 : vector<1x1x8x8xbf16> to vector<1x8x8xbf16>
    %51 = vector.shape_cast %50 : vector<1x8x8xbf16> to vector<8x8xbf16>
    %52 = vector.extract_strided_slice %45 {offsets = [0, 2, 0, 0], sizes = [1, 1, 8, 8], strides = [1, 1, 1, 1]} : vector<1x4x8x8xbf16> to vector<1x1x8x8xbf16>
    %53 = vector.shape_cast %52 : vector<1x1x8x8xbf16> to vector<1x8x8xbf16>
    %54 = vector.shape_cast %53 : vector<1x8x8xbf16> to vector<8x8xbf16>
    %55 = vector.extract_strided_slice %45 {offsets = [0, 3, 0, 0], sizes = [1, 1, 8, 8], strides = [1, 1, 1, 1]} : vector<1x4x8x8xbf16> to vector<1x1x8x8xbf16>
    %56 = vector.shape_cast %55 : vector<1x1x8x8xbf16> to vector<1x8x8xbf16>
    %57 = vector.shape_cast %56 : vector<1x8x8xbf16> to vector<8x8xbf16>
    %58 = tpu.concatenate %48, %51, %54, %57 in 1 : vector<8x8xbf16>, vector<8x8xbf16>, vector<8x8xbf16>, vector<8x8xbf16> -> vector<8x32xbf16>
    %c0_29 = arith.constant 0 : index
    %c0_30 = arith.constant 0 : index
    %59 = vector.load %arg18[%c0_29, %c0_30] : memref<8x32xf32, #tpu.memory_space<vmem>>, vector<8x32xf32>
    %c0_31 = arith.constant 0 : index
    %c0_32 = arith.constant 0 : index
    %c0_33 = arith.constant 0 : index
    %60 = vector.load %arg7[%c0_31, %c0_32, %c0_33] : memref<1x32x32xbf16, #tpu.memory_space<vmem>>, vector<1x32x32xbf16>
    %61 = vector.shape_cast %60 : vector<1x32x32xbf16> to vector<32x32xbf16>
    %cst_34 = arith.constant dense<0.000000e+00> : vector<8x32xf32>
    %62 = tpu.matmul %58, %61, %cst_34 {dimension_numbers = #tpu.dot_dimension_numbers<[1], [0], [0], [1], [0, 0, 1, 1], [], []>} : vector<8x32xbf16>, vector<32x32xbf16>, vector<8x32xf32> -> vector<8x32xf32>
    %63 = arith.addf %59, %62 : vector<8x32xf32>
    %c0_35 = arith.constant 0 : index
    %c0_36 = arith.constant 0 : index
    %64 = vector.load %arg18[%c0_35, %c0_36] : memref<8x32xf32, #tpu.memory_space<vmem>>, vector<8x32xf32>
    tpu.vector_store %arg18[%c0_35, %c0_36], %63 {strides = array<i32>} : memref<8x32xf32, #tpu.memory_space<vmem>>, vector<8x32xf32>,
    %c2_i32 = arith.constant 2 : i32
    %65 = arith.cmpi eq, %arg1, %c2_i32 : i32
    %66 = arith.extui %65 : i1 to i32
    %c0_i32_37 = arith.constant 0 : i32
    %67 = arith.cmpi ne, %66, %c0_i32_37 : i32
    scf.if %67 {
      %c0_38 = arith.constant 0 : index
      %c0_39 = arith.constant 0 : index
      %68 = vector.load %arg18[%c0_38, %c0_39] : memref<8x32xf32, #tpu.memory_space<vmem>>, vector<8x32xf32>
      %c0_40 = arith.constant 0 : index
      %c0_41 = arith.constant 0 : index
      %69 = vector.load %arg8[%c0_40, %c0_41] : memref<1x32xf32, #tpu.memory_space<vmem>>, vector<1x32xf32>
      %70 = vector.broadcast %69 : vector<1x32xf32> to vector<8x32xf32>
      %71 = arith.addf %68, %70 : vector<8x32xf32>
      %72 = arith.negf %71 : vector<8x32xf32>
      %73 = math.exp %72 : vector<8x32xf32>
      %cst_42 = arith.constant 1.000000e+00 : f32
      %74 = vector.broadcast %cst_42 : f32 to vector<8x32xf32>
      %75 = arith.addf %74, %73 : vector<8x32xf32>
      %76 = arith.divf %74, %75 : vector<8x32xf32>
      %77 = arith.mulf %71, %76 : vector<8x32xf32>
      %78 = arith.truncf %77 : vector<8x32xf32> to vector<8x32xbf16>
      %c0_43 = arith.constant 0 : index
      %c0_44 = arith.constant 0 : index
      %79 = vector.load %arg9[%c0_43, %c0_44] : memref<32x32xbf16, #tpu.memory_space<vmem>>, vector<32x32xbf16>
      %cst_45 = arith.constant dense<0.000000e+00> : vector<8x32xf32>
      %80 = tpu.matmul %78, %79, %cst_45 {dimension_numbers = #tpu.dot_dimension_numbers<[1], [0], [0], [1], [0, 0, 1, 1], [], []>} : vector<8x32xbf16>, vector<32x32xbf16>, vector<8x32xf32> -> vector<8x32xf32>
      %c0_46 = arith.constant 0 : index
      %c0_47 = arith.constant 0 : index
      %81 = vector.load %arg10[%c0_46, %c0_47] : memref<1x32xf32, #tpu.memory_space<vmem>>, vector<1x32xf32>
      %82 = vector.broadcast %81 : vector<1x32xf32> to vector<8x32xf32>
      %83 = arith.addf %80, %82 : vector<8x32xf32>
      %c0_48 = arith.constant 0 : index
      %c0_49 = arith.constant 0 : index
      %c0_50 = arith.constant 0 : index
      %84 = vector.load %arg2[%c0_48, %c0_49, %c0_50] : memref<1x8x32xbf16, #tpu.memory_space<vmem>>, vector<1x8x32xbf16>
      %85 = vector.shape_cast %84 : vector<1x8x32xbf16> to vector<8x32xbf16>
      %86 = arith.extf %85 : vector<8x32xbf16> to vector<8x32xf32>
      %87 = arith.addf %83, %86 : vector<8x32xf32>
      %cst_51 = arith.constant dense<0.000000e+00> : vector<8xf32>
      %88 = vector.multi_reduction <add>, %87, %cst_51 [1] : vector<8x32xf32> to vector<8xf32>
      %89 = vector.shape_cast %88 : vector<8xf32> to vector<8x1xf32>
      %cst_52 = arith.constant 3.200000e+01 : f32
      %90 = vector.broadcast %cst_52 : f32 to vector<8x1xf32>
      %91 = arith.divf %89, %90 : vector<8x1xf32>
      %92 = vector.broadcast %91 : vector<8x1xf32> to vector<8x32xf32>
      %93 = arith.subf %87, %92 : vector<8x32xf32>
      %94 = arith.mulf %93, %93 : vector<8x32xf32>
      %cst_53 = arith.constant dense<0.000000e+00> : vector<8xf32>
      %95 = vector.multi_reduction <add>, %94, %cst_53 [1] : vector<8x32xf32> to vector<8xf32>
      %96 = vector.shape_cast %95 : vector<8xf32> to vector<8x1xf32>
      %cst_54 = arith.constant 3.200000e+01 : f32
      %97 = vector.broadcast %cst_54 : f32 to vector<8x1xf32>
      %98 = arith.divf %96, %97 : vector<8x1xf32>
      %99 = vector.broadcast %91 : vector<8x1xf32> to vector<8x32xf32>
      %100 = arith.subf %87, %99 : vector<8x32xf32>
      %cst_55 = arith.constant 9.99999997E-7 : f32
      %101 = vector.broadcast %cst_55 : f32 to vector<8x1xf32>
      %102 = arith.addf %98, %101 : vector<8x1xf32>
      %103 = math.rsqrt %102 : vector<8x1xf32>
      %104 = vector.broadcast %103 : vector<8x1xf32> to vector<8x32xf32>
      %105 = arith.mulf %100, %104 : vector<8x32xf32>
      %c0_56 = arith.constant 0 : index
      %c0_57 = arith.constant 0 : index
      %106 = vector.load %arg11[%c0_56, %c0_57] : memref<1x32xf32, #tpu.memory_space<vmem>>, vector<1x32xf32>
      %107 = vector.broadcast %106 : vector<1x32xf32> to vector<8x32xf32>
      %108 = arith.mulf %105, %107 : vector<8x32xf32>
      %c0_58 = arith.constant 0 : index
      %c0_59 = arith.constant 0 : index
      %109 = vector.load %arg12[%c0_58, %c0_59] : memref<1x32xf32, #tpu.memory_space<vmem>>, vector<1x32xf32>
      %110 = vector.broadcast %109 : vector<1x32xf32> to vector<8x32xf32>
      %111 = arith.addf %108, %110 : vector<8x32xf32>
      %112 = vector.shape_cast %111 : vector<8x32xf32> to vector<1x8x32xf32>
      %c0_60 = arith.constant 0 : index
      %c0_61 = arith.constant 0 : index
      %c0_62 = arith.constant 0 : index
      %113 = vector.load %arg13[%c0_60, %c0_61, %c0_62] : memref<1x8x32xf32, #tpu.memory_space<vmem>>, vector<1x8x32xf32>
      tpu.vector_store %arg13[%c0_60, %c0_61, %c0_62], %112 {strides = array<i32>} : memref<1x8x32xf32, #tpu.memory_space<vmem>>, vector<1x8x32xf32>,
    } else {
    }
    return
  }
  func.func @transform_0(%arg0: i32, %arg1: i32) -> (i32, i32, i32) {
    %c0_i32 = arith.constant 0 : i32
    %c0_i32_0 = arith.constant 0 : i32
    %c0_i32_1 = arith.constant 0 : i32
    return %arg0, %c0_i32, %c0_i32_0 : i32, i32, i32
  }
  func.func @transform_1(%arg0: i32, %arg1: i32) -> (i32, i32, i32) {
    %c0_i32 = arith.constant 0 : i32
    %c0_i32_0 = arith.constant 0 : i32
    %c0_i32_1 = arith.constant 0 : i32
    return %arg0, %c0_i32, %c0_i32_0 : i32, i32, i32
  }
  func.func @transform_2(%arg0: i32, %arg1: i32) -> (i32, i32, i32, i32) {
    %c0_i32 = arith.constant 0 : i32
    %c0_i32_0 = arith.constant 0 : i32
    %c0_i32_1 = arith.constant 0 : i32
    return %arg1, %arg0, %c0_i32, %c0_i32_0 : i32, i32, i32, i32
  }
  func.func @transform_3(%arg0: i32, %arg1: i32) -> (i32, i32) {
    %c0_i32 = arith.constant 0 : i32
    %c0_i32_0 = arith.constant 0 : i32
    %c0_i32_1 = arith.constant 0 : i32
    return %c0_i32, %c0_i32_0 : i32, i32
  }
  func.func @transform_4(%arg0: i32, %arg1: i32) -> (i32, i32) {
    %c0_i32 = arith.constant 0 : i32
    %c0_i32_0 = arith.constant 0 : i32
    %c0_i32_1 = arith.constant 0 : i32
    return %c0_i32, %c0_i32_0 : i32, i32
  }
  func.func @transform_5(%arg0: i32, %arg1: i32) -> (i32, i32, i32) {
    %c0_i32 = arith.constant 0 : i32
    %c0_i32_0 = arith.constant 0 : i32
    %c0_i32_1 = arith.constant 0 : i32
    return %arg1, %c0_i32, %c0_i32_0 : i32, i32, i32
  }
  func.func @transform_6(%arg0: i32, %arg1: i32) -> (i32, i32) {
    %c0_i32 = arith.constant 0 : i32
    %c0_i32_0 = arith.constant 0 : i32
    %c0_i32_1 = arith.constant 0 : i32
    return %c0_i32, %c0_i32_0 : i32, i32
  }
  func.func @transform_7(%arg0: i32, %arg1: i32) -> (i32, i32) {
    %c0_i32 = arith.constant 0 : i32
    %c0_i32_0 = arith.constant 0 : i32
    %c0_i32_1 = arith.constant 0 : i32
    return %c0_i32, %c0_i32_0 : i32, i32
  }
  func.func @transform_8(%arg0: i32, %arg1: i32) -> (i32, i32) {
    %c0_i32 = arith.constant 0 : i32
    %c0_i32_0 = arith.constant 0 : i32
    %c0_i32_1 = arith.constant 0 : i32
    return %c0_i32, %c0_i32_0 : i32, i32
  }
  func.func @transform_9(%arg0: i32, %arg1: i32) -> (i32, i32) {
    %c0_i32 = arith.constant 0 : i32
    %c0_i32_0 = arith.constant 0 : i32
    %c0_i32_1 = arith.constant 0 : i32
    return %c0_i32, %c0_i32_0 : i32, i32
  }
  func.func @transform_10(%arg0: i32, %arg1: i32) -> (i32, i32) {
    %c0_i32 = arith.constant 0 : i32
    %c0_i32_0 = arith.constant 0 : i32
    %c0_i32_1 = arith.constant 0 : i32
    return %c0_i32, %c0_i32_0 : i32, i32
  }
  func.func @transform_11(%arg0: i32, %arg1: i32) -> (i32, i32, i32) {
    %c0_i32 = arith.constant 0 : i32
    %c0_i32_0 = arith.constant 0 : i32
    %c0_i32_1 = arith.constant 0 : i32
    return %arg0, %c0_i32, %c0_i32_0 : i32, i32, i32
  }
  func.func @transform_12(%arg0: i32, %arg1: i32) -> (i32, i32, i32, i32) {
    %c0_i32 = arith.constant 0 : i32
    %c0_i32_0 = arith.constant 0 : i32
    %c0_i32_1 = arith.constant 0 : i32
    return %arg0, %arg1, %c0_i32, %c0_i32_0 : i32, i32, i32, i32
  }
}

</mosaic_0001>

<bundles_post_ra>
// kernel: tpu_custom_call.1
= control target key start
LH: loop header
LB: loop body
LE: loop exit
PB: predicated region body
PF: predicated region fallthrough
CT: control target
= control target key end

     0   :  { %s2679_s0 = inlined_call_operand.hbm [shape: bf16[2,8,32], index: 0, kind: input, shape index: {}]   ;;  %s2680_s1 = inlined_call_operand.hbm [shape: f32[2,8,8], index: 1, kind: input, shape index: {}]   ;;  %s2681_s2 = inlined_call_operand.vmem [shape: f32[3,2,1,1], index: 2, kind: input, shape index: {}]   ;;  %s2682_s3 = inlined_call_operand.vmem [shape: bf16[32,96], index: 3, kind: input, shape index: {}]   ;;  %s2683_s4 = inlined_call_operand.vmem [shape: f32[1,96], index: 4, kind: input, shape index: {}]   ;;  %s2684_s5 = inlined_call_operand.hbm [shape: bf16[3,32,32], index: 5, kind: input, shape index: {}]   ;;  %s2685_s6 = inlined_call_operand.vmem [shape: f32[1,32], index: 6, kind: input, shape index: {}]   ;;  %s2686_s7 = inlined_call_operand.vmem [shape: bf16[32,32], index: 7, kind: input, shape index: {}]   ;;  %s2687_s8 = inlined_call_operand.vmem [shape: f32[1,32], index: 8, kind: input, shape index: {}]   ;;  %s2688_s9 = inlined_call_operand.vmem [shape: f32[1,32], index: 9, kind: input, shape index: {}]   ;;  %s2689_s10 = inlined_call_operand.vmem [shape: f32[1,32], index: 10, kind: input, shape index: {}]   ;;  %s2690_s11 = inlined_call_operand.hbm [shape: f32[2,8,32], index: 11, kind: output, shape index: {0}]   ;;  %s2691_s12 = inlined_call_operand.vmem [shape: bf16[2,12,8,8], index: 12, kind: output, shape index: {1}]  }
   0x1   :  { %2708 = sst [smem:[#allocation24_spill]] %s2679_s0 }
   0x2   :  { %2709 = sst [smem:[#allocation25_spill]] %s2680_s1 }
   0x3   :  { %2710 = sst [smem:[#allocation26_spill]] %s2682_s3 }
   0x4   :  { %2711 = sst [smem:[#allocation27_spill]] %s2683_s4 }
   0x5   :  { %2712 = sst [smem:[#allocation28_spill]] %s2684_s5 }
   0x6   :  { %2713 = sst [smem:[#allocation29_spill]] %s2685_s6 }
   0x7   :  { %2714 = sst [smem:[#allocation30_spill]] %s2686_s7 }
   0x8   :  { %2715 = sst [smem:[#allocation31_spill]] %s2687_s8 }
   0x9   :  { %2716 = sst [smem:[#allocation32_spill]] %s2688_s9 }
   0xa   :  { %2717 = sst [smem:[#allocation33_spill]] %s2689_s10 }
   0xb   :  { %2718 = sst [smem:[#allocation34_spill]] %s2690_s11 }
   0xc   :  { %18 = vsyncpa [#allocation7], 0 }
   0xd   :  { %20 = vsyncpa [#allocation7 + $0x1], 0 }
   0xe   :  { %21 = vsyncpa [#allocation10], 0 }
   0xf   :  { %23 = vsyncpa [#allocation10 + $0x1], 0 }
  0x10   :  { %24 = vsyncpa [#allocation8], 0 }
  0x11   :  { %26 = vsyncpa [#allocation8 + $0x1], 0  ;;  %s2195_s21 = smov 0   ;;  %s2197_s22 = smov 0  }
  0x12   :  { %s2199_s23 = smov 0   ;;  %s2201_s24 = smov 0  }
  0x13   :  { %s2203_s25 = smov 0   ;;  %s2205_s26 = smov 0  }
  0x14   :  { %s2207_s27 = smov 0   ;;  %s2209_s28 = smov 0  }
  0x15   :  { %s2211_s29 = smov 0   ;;  %s2213_s30 = smov 0  }
  0x16   :  { %s2215_s13 = smov 0  }
  0x17 LB: > { %2719 = sst [smem:[#allocation17_spill]] %s2079_s24  ;;  %s2249_s14 = sadd.s32 4294967295, %s2107_s13   ;;  %s2107_s13 = sphi %s2215_s13, %s2774_s13   ;;  %s2103_s30 = sphi %s2213_s30, %s2765_s30   ;;  %s2099_s29 = sphi %s2211_s29, %s2773_s29   ;;  %s2095_s28 = sphi %s2209_s28, %s2763_s28   ;;  %s2091_s27 = sphi %s2207_s27, %s2772_s27   ;;  %s2087_s26 = sphi %s2205_s26, %s2771_s26   ;;  %s2083_s25 = sphi %s2203_s25, %s2770_s25   ;;  %s2079_s24 = sphi %s2201_s24, %s2769_s24   ;;  %s2075_s23 = sphi %s2199_s23, %s2768_s23   ;;  %s2071_s22 = sphi %s2197_s22, %s2767_s22   ;;  %s2067_s21 = sphi %s2195_s21, %s2766_s21  }
  0x18   : > { %2720 = sst [smem:[#allocation18_spill]] %s2103_s30  ;;  %s1574_s15 = sadd.s32 4294967294, %s2107_s13  }
  0x19   : > { %2721 = sst [smem:[#allocation19_spill]] %s2107_s13  ;;  %p58_p0 = scmp.ne.s32.totalorder %s2087_s26, %s2083_s25 }
  0x1a   : > { %p59_p1 = scmp.eq.s32.totalorder %s2107_s13, 0  ;;  %p64_p2 = scmp.ne.s32.totalorder %s2083_s25, %s2079_s24 }
  0x1b   : > { %p65_p3 = scmp.eq.s32.totalorder %s2249_s14, 0  ;;  %p180_p5 = scmp.ne.s32.totalorder %s2075_s23, %s2071_s22 }
  0x1c   : > { %p2260_p4 = por %p59_p1, %p58_p0  ;;  %p186_p7 = scmp.ne.s32.totalorder %s2071_s22, %s2067_s21 }
  0x1d   : > { %p2266_p6 = por %p65_p3, %p64_p2  ;;  %p2271_p8 = por %p180_p5, %p59_p1 }
  0x1e   : > { %p315_p9 = scmp.eq.s32.totalorder %s2249_s14, 5  ;;  %p2276_p10 = por %p186_p7, %p65_p3 }
  0x1f   : > { %s2723_s19 = scalar_select %p2266_p6, 1, 0 }
  0x20   : > { %s2725_s17 = scalar_select %p2276_p10, 1, 0 }
  0x21   : > { %p321_p11 = scmp.eq.s32.totalorder %s1574_s15, 5  ;;  %p2280_p12 = por %p315_p9, %p58_p0 }
  0x22   : > { %p1751_p6 = scmp.lt.s32.totalorder %s2107_s13, 6  ;;  %s2290_s21 = sand.u32 1, %s2087_s26  }
  0x23   : > { %s2726_s16 = scalar_select %p2280_p12, 1, 0 }
  0x24   : > { %p2284_p13 = por %p321_p11, %p64_p2  ;;  %s408_s11 = sand.u32 1, %s2107_s13  }
  0x25   : > { %2727 = sst [smem:[#allocation20_spill]] %s2726_s16  ;;  %p2295_p1 = pnand %p1751_p6, %p2260_p4 }
  0x26   : > { %s2728_s24 = scalar_select %p2284_p13, 1, 0 }
  0x27   : > { %s1579_s15 = sshll.u32 %s2290_s21, 3  ;;  %s1580_s9 = sshll.u32 %s2103_s30, 7 }
  0x28   : > { %2729 = sst [smem:[#allocation21_spill]] %s2728_s24  ;;  %s412_s24 = scalar_lea.vmem [#allocation9], %s1579_s15 }
  0x29   : > { %s2731_s1 = sld [smem:[#allocation25_spill]]  ;;  %s419_s7 = sshll.u32 %s412_s24, 4  ;;  %s2306_s7 = int_to_ptr.vmem [resolvable:$true] %s419_s7 }
  0x2a   : > { %p2310_p0 = pnand %p1751_p6, %p2271_p8  ;;  %s2314_s4 = scalar_lea.sflag [#allocation10], %s408_s11 }
  0x2b   : > { %p1889_p3 = pneg %p2295_p1 }
  0x2c   : > { %s2732_s18 = scalar_select %p2310_p0, 1, 0 }
  0x2f   : > { %s2304_s6 = scalar_lea.hbm %s2731_s1, %s1580_s9  ;;  %s1892_s24 = scalar_lea.hbm %s2731_s1, 256 }
  0x30   : > { %s1887_s3 = scalar_lea.hbm %s2304_s6, 128  ;;  %p1893_p6 = scmp.lt.u32.totalorder %s2304_s6, %s2731_s1 }
  0x31   : > { %p1888_p2 = scmp.ne.s32.totalorder %s2304_s6, %s1887_s3  ;;  %p1894_p7 = scmp.lt.u32.totalorder %s1892_s24, %s1887_s3 }
  0x32   : > { %p1896_p9 = scmp.lt.u32.totalorder %s1887_s3, %s2304_s6 }
  0x33   : > { %p1890_p4 = pnand %p1889_p3, %p1888_p2  ;;  %p1895_p8 = por %p1894_p7, %p1893_p6 }
  0x35   : > { %p1891_p5 = pneg %p1890_p4  ;;  %p1897_p11 = por %p1896_p9, %p1895_p8 }
  0x37   : > { %p1898_p13 = pnand %p1897_p11, %p1891_p5 }
  0x39   : > { %1901 = shalt.err (!%p1898_p13)
}
  0x3a   : > { %s1902_s11 = scalar_lea.vmem %s2306_s7, 128  ;;  %s2109_s15 = smov [#allocation9]  }
  0x3b   : > { %p1903_p2 = scmp.ne.s32.totalorder %s2306_s7, %s1902_s11  ;;  %s1907_s8 = sshll.u32 %s2109_s15, 4  ;;  %s1908_s8 = int_to_ptr.vmem [resolvable:$false] %s1907_s8 }
  0x3c   : > { %s1909_s9 = scalar_lea.vmem %s1908_s8, 256  ;;  %p1910_p10 = scmp.lt.s32.totalorder %s2306_s7, %s1908_s8 }
  0x3d   : > { %p1905_p4 = pnand %p1903_p2, %p1889_p3  ;;  %p1911_p6 = scmp.lt.s32.totalorder %s1909_s9, %s1902_s11 }
  0x3f   : > { %p1906_p12 = pneg %p1905_p4  ;;  %p1912_p7 = por %p1911_p6, %p1910_p10 }
  0x41   : > { %p1913_p8 = pnand %p1912_p7, %p1906_p12 }
  0x43   : > { %1916 = shalt.err (!%p1913_p8)
}
  0x44   : > { %1743 = dma.hbm_to_vmem [thread:$0]  (!%p2295_p1), %s2304_s6, 128, %s2306_s7, %s2314_s4  }
  0x45   : > { %p1584_p13 = scmp.ge.s32.totalorder %s2107_s13, 1  ;;  %p455_p5 = scmp.lt.s32.totalorder %s2107_s13, 7 }
  0x46   : > { %s1577_s24 = sshll.u32 %s2290_s21, 2  ;;  %s1578_s16 = sshll.u32 %s2103_s30, 6 }
  0x47   : > { %p2344_p9 = pnand %p1584_p13, %p455_p5  ;;  %s2734_s0 = sld [smem:[#allocation24_spill]] }
  0x48   : > { %s394_s8 = scalar_lea.vmem [#allocation6], %s1577_s24  ;;  %s391_s6 = scalar_lea.sflag [#allocation7], %s2290_s21 }
  0x49   : > { %s2733_s3 = scalar_select %p2344_p9, 1, 0 }
  0x4a   : > { %s401_s9 = sshll.u32 %s394_s8, 4  ;;  %s402_s9 = int_to_ptr.vmem [resolvable:$true] %s401_s9 }
  0x4d   : > { %s2353_s15 = scalar_lea.hbm %s2734_s0, %s1578_s16  ;;  %s1922_s20 = scalar_lea.hbm %s2734_s0, 128 }
  0x4e   : > { %s1917_s7 = scalar_lea.hbm %s2353_s15, 64  ;;  %p1923_p2 = scmp.lt.u32.totalorder %s2353_s15, %s2734_s0 }
  0x4f   : > { %p1918_p10 = scmp.ne.s32.totalorder %s2353_s15, %s1917_s7  ;;  %p1924_p4 = scmp.lt.u32.totalorder %s1922_s20, %s1917_s7 }
  0x50   : > { %p1926_p7 = scmp.lt.u32.totalorder %s1917_s7, %s2353_s15 }
  0x51   : > { %p1920_p12 = pnand %p1918_p10, %p1889_p3  ;;  %p1925_p6 = por %p1924_p4, %p1923_p2 }
  0x53   : > { %p1921_p11 = pneg %p1920_p12  ;;  %p1927_p8 = por %p1926_p7, %p1925_p6 }
  0x55   : > { %p1928_p13 = pnand %p1927_p8, %p1921_p11 }
  0x57   : > { %1931 = shalt.err (!%p1928_p13)
}
  0x58   : > { %s1932_s21 = scalar_lea.vmem %s402_s9, 64  ;;  %s2110_s24 = smov [#allocation6]  }
  0x59   : > { %p1933_p5 = scmp.ne.s32.totalorder %s402_s9, %s1932_s21  ;;  %s1937_s1 = sshll.u32 %s2110_s24, 4  ;;  %s1938_s1 = int_to_ptr.vmem [resolvable:$false] %s1937_s1 }
  0x5a   : > { %s1939_s13 = scalar_lea.vmem %s1938_s1, 128  ;;  %p1940_p9 = scmp.lt.s32.totalorder %s402_s9, %s1938_s1 }
  0x5b   : > { %p1935_p10 = pnand %p1933_p5, %p1889_p3  ;;  %p1941_p0 = scmp.lt.s32.totalorder %s1939_s13, %s1932_s21 }
  0x5d   : > { %p1936_p12 = pneg %p1935_p10  ;;  %p1942_p2 = por %p1941_p0, %p1940_p9 }
  0x5f   : > { %p1943_p4 = pnand %p1942_p2, %p1936_p12 }
  0x61   : > { %1946 = shalt.err (!%p1943_p4)
}
  0x62   : > { %1740 = dma.hbm_to_vmem [thread:$0]  (!%p2295_p1), %s2353_s15, 64, %s402_s9, %s391_s6  }
  0x63   : > { %s173_s8 = sadd.s32 1, %s2075_s23  ;;  %s41_s7 = sadd.s32 1, %s2099_s29 }
  0x64   : > { %s438_s20 = sand.u32 1, %s2075_s23   ;;  %p42_p3 = scmp.ge.s32.totalorder %s41_s7, 3 }
  0x65   : > { %s1581_s16 = sshll.u32 %s438_s20, 4  ;;  %s1626_s11 = sshll.u32 %s2099_s29, 8 }
  0x66   : > { %s2776_s7 = smov (%p42_p3, %s41_s7), 0  ;;  %s2736_s10 = sadd.s32 1, %s2103_s30 }
  0x67   : > { %2735 = sst [smem:[#allocation22_spill]] %s2776_s7  ;;  %s2778_s10 = smov (!%p42_p3, %s2736_s10), %s2103_s30 }
  0x68   : > { %s170_s21 = ssub.s32 %s2099_s29, %s2776_s7  ;;  %s2737_s5 = sld [smem:[#allocation28_spill]] }
  0x69   : > { %p46_p1 = scmp.ge.s32.totalorder %s2778_s10, 2  ;;  %p171_p0 = scmp.eq.s32.totalorder %s170_s21, 0 }
  0x6a   : > { %s440_s9 = scalar_lea.vmem [#allocation11], %s1581_s16  ;;  %p2740_p6 = scmp.ne.s32.totalorder %s2732_s18, 0 }
  0x6b   : > { %s447_s6 = sshll.u32 %s440_s9, 4  ;;  %s2780_s10 = smov (%p46_p1, %s2778_s10), 0  ;;  %s2398_s6 = int_to_ptr.vmem [resolvable:$true] %s447_s6 }
  0x6c   : > { %2738 = sst [smem:[#allocation23_spill]] %s2780_s10  ;;  %s48_s20 = ssub.s32 %s2103_s30, %s2780_s10 }
  0x6d   : > { %s2394_s13 = scalar_select %p171_p0, %s2075_s23, %s173_s8  }
  0x6e   : > { %s2389_s15 = scalar_lea.hbm %s2737_s5, %s1626_s11  ;;  %p2400_p9 = scmp.eq.s32.totalorder %s48_s20, 0 }
  0x6f   : > { %s1947_s11 = scalar_lea.hbm %s2389_s15, 256  ;;  %p1949_p7 = pneg %p2740_p6 }
  0x70   : > { %p1948_p11 = scmp.ne.s32.totalorder %s2389_s15, %s1947_s11  ;;  %s1952_s8 = scalar_lea.hbm %s2737_s5, 768 }
  0x71   : > { %p1953_p5 = scmp.lt.u32.totalorder %s2389_s15, %s2737_s5  ;;  %p1954_p10 = scmp.lt.u32.totalorder %s1952_s8, %s1947_s11 }
  0x72   : > { %p1950_p8 = pnand %p1949_p7, %p1948_p11  ;;  %p1956_p2 = scmp.lt.u32.totalorder %s1947_s11, %s2389_s15 }
  0x73   : > { %p1955_p12 = por %p1954_p10, %p1953_p5 }
  0x74   : > { %p1951_p13 = pneg %p1950_p8 }
  0x75   : > { %p1957_p4 = por %p1956_p2, %p1955_p12 }
  0x77   : > { %p1958_p3 = pnand %p1957_p4, %p1951_p13 }
  0x79   : > { %1961 = shalt.err (!%p1958_p3)
}
  0x7a   : > { %s1962_s20 = scalar_lea.vmem %s2398_s6, 256  ;;  %s2111_s16 = smov [#allocation11]  }
  0x7b   : > { %p1963_p1 = scmp.ne.s32.totalorder %s2398_s6, %s1962_s20  ;;  %s1967_s21 = sshll.u32 %s2111_s16, 4  ;;  %s1968_s21 = int_to_ptr.vmem [resolvable:$false] %s1967_s21 }
  0x7c   : > { %s1969_s1 = scalar_lea.vmem %s1968_s21, 512  ;;  %p1970_p8 = scmp.lt.s32.totalorder %s2398_s6, %s1968_s21 }
  0x7d   : > { %p1965_p0 = pnand %p1963_p1, %p1949_p7  ;;  %p1971_p5 = scmp.lt.s32.totalorder %s1969_s1, %s1962_s20 }
  0x7f   : > { %p1966_p11 = pneg %p1965_p0  ;;  %p1972_p10 = por %p1971_p5, %p1970_p8 }
  0x81   : > { %p1973_p12 = pnand %p1972_p10, %p1966_p11 }
  0x83   : > { %1976 = shalt.err (!%p1973_p12)
}
  0x84   : > { %s2112_s11 = smov 64   ;;  %s2113_s8 = smov 4  }
  0x85   : > { %1746 = dma.hbm_to_vmem [thread:$0]  (!%p2740_p6), %s2389_s15, 256, %s2398_s6, %s2314_s4, %s2112_s11, %s2112_s11, %s2113_s8  }
  0x86   : > { %s2741_s9 = sadd.s32 1, %s2087_s26  ;;  %p2742_p7 = scmp.ne.s32.totalorder %s2733_s3, 0 }
  0x87   : > { %s2435_s16 = scalar_select %p2400_p9, %s2087_s26, %s2741_s9  }
  0x88   : > { %459 = sbr.rel (%p2742_p7) target bundleno = 2322 (0x912), region = 64  ;;  %s2440_s20 = sand.u32 (!%p2742_p7), 1, %s2083_s25  }
  0x89   : > { %s1585_s21 = sshll.u32 (!%p2742_p7), %s2440_s20, 2  ;;  %s462_s1 = scalar_lea.sflag (!%p2742_p7), [#allocation7], %s2440_s20 }
  0x8a   : > { %s2444_s0 = scalar_lea.vmem (!%p2742_p7), [#allocation6], %s1585_s21  ;;  %p2743_p13 = scmp.ne.s32.totalorder (!%p2742_p7), %s2723_s19, 0 }
  0x8f   : > { %2050 = dma.done.wait (%p2743_p13), %s462_s1, 64  }
  0x90   : > { %2052 = vsyncadd (%p2743_p13), %s462_s1, 4294967232  ;;  %s470_s4 = sand.u32 1, %s2249_s14   ;;  %s1586_s18 = sshll.u32 %s2440_s20, 3 }
  0x91   : > { %s471_s3 = scalar_lea.sflag [#allocation10], %s470_s4  ;;  %s2452_s15 = scalar_lea.vmem [#allocation9], %s1586_s18 }
  0x92   : > { %2054 = dma.done.wait (%p2743_p13), %s471_s3, 128  }
  0x93   : > { %2056 = vsyncadd (%p2743_p13), %s471_s3, 4294967168  ;;  %s481_s6 = sand.u32 1, %s2071_s22   ;;  %p2744_p9 = scmp.ne.s32.totalorder %s2725_s17, 0 }
  0x94   : > { %s2459_s24 = sshll.u32 %s481_s6, 4 }
  0x95   : > { %2058 = dma.done.wait (%p2744_p9), %s471_s3, 256  }
  0x96   : > { %2060 = vsyncadd (%p2744_p9), %s471_s3, 4294967040  ;;  %p550_p6 = scmp.lt.s32.totalorder %s2091_s27, 2  ;;  %p552_p2 = scmp.lt.s32.totalorder %s2095_s28, 1 }
  0x97   : > { %s1590_s14 = sshll.u32 %s2091_s27, 2  ;;  %s2482_s30 = scalar_lea.vmem [#allocation12], %s1586_s18 }
  0x98   : > { %s551_s19 = scalar_select %p550_p6, %s2091_s27, 2 }
  0x99   : > { %s553_s8 = scalar_select %p552_p2, %s2095_s28, 1 }
  0x9a   : > { %s1589_s9 = sshll.u32 %s551_s19, 1  ;;  %p560_p4 = scmp.lt.s32.totalorder %s1590_s14, 11 }
  0x9b   : > { %s2471_s21 = sadd.s32 %s1589_s9, %s553_s8  ;;  %s1728_s1 = smul.u32 12, %s553_s8 }
  0x9c   : > { %s556_s17 = scalar_lea.vmem %s2681_s2, %s2471_s21  ;;  %s2782_s14 = smov (!%p560_p4, %s1590_s14), 11 }
  0x9d   : > { %s563_s3 = sadd.s32 %s1728_s1, %s2782_s14  ;;  %p1592_p3 = scmp.ne.s32.totalorder %s2091_s27, 0 }
  0x9e   : > { %s1591_s11 = sshll.u32 %s563_s3, 2  ;;  %s2745_s8 = sld [smem:[#allocation26_spill]] (!%p1592_p3)  ;;  %v2114_v1 = vmov (!%p1592_p3), 0.0   ;;  %vm2115_vm0 = vmmov (!%p1592_p3), 0   ;;  %vm596_vm1 = vcmask (!%p1592_p3), 261120   ;;  %vm654_vm2 = vcmask (!%p1592_p3), 60416  }
  0x9f   : > { %s2480_s7 = scalar_lea.vmem %s2691_s12, %s1591_s11  ;;  %571 = sbr.rel (%p1592_p3) target bundleno = 631 (0x277), region = 80  ;;  %1656 = vmatprep.subr.bf16.mxu0 (!%p1592_p3), %v2114_v1  ;;  %1660 = vmatprep.mubr.msk.bf16.mxu0 (!%p1592_p3), %vm2115_vm0, %v2114_v1  ;;  %703 = vst.msk [vmem:[#allocation5] sm:$0xff] (!%p1592_p3), %vm596_vm1, %v2114_v1  ;;  %v572_v3 = vld [vmem:[%s2444_s0] sm:$0xf] (!%p1592_p3) }
  0xa0   : > { %s2746_s18 = sld [smem:[#allocation27_spill]] (!%p1592_p3)  ;;  %s2116_s11 = smov (!%p1592_p3), 104  }
  0xa1   : > { %s2117_s4 = smov (!%p1592_p3), 120   ;;  %s2118_s6 = smov (!%p1592_p3), 112  }
  0xa2   : > { %s2119_s3 = smov (!%p1592_p3), 96   ;;  %s2120_s19 = smov (!%p1592_p3), 64  }
  0xa4   : > { %v1858_v0 = vld [vmem:[%s2745_s8] sm:$0xff] (!%p1592_p3)   ;;  %v1859_v2 = vld [vmem:[%s2745_s8 + $0x8] sm:$0xff] (!%p1592_p3)  }
  0xa5   : > { %1657 = vmatpush3.bf16.msra.mxu0 (!%p1592_p3), %v1858_v0 }
  0xa6   : > { %1658 = vmatprep.subr.bf16.mxu0 %v2114_v1  ;;  %v1593_v4 = vld [vmem:[%s2746_s18] ss:$0 sm:$0xff] }
  0xa9   : > { %1659 = vmatpush3.bf16.msra.mxu0 %v1859_v2 }
  0xac   : > { %1661 = vmatmul.mubr.msk.bf16.vlgmr.msra.gmra.mrb[0].mxu0 %vm596_vm1, %v572_v3 }
 0x17f   : > { %v634_v5 = vpop.f32.mrb[0].mxu0 }
 0x180   : > { %v635_v6 = vadd.f32 %v1593_v4, %v634_v5  ;;  %v1662_v7 = vpop.f32.mrb[1].mxu0 }
 0x181   : > { %v637_v8 = vpop.f32.mrb[2].mxu0 }
 0x182   : > { %647 = vrot.lane.b32.xlu1 %v635_v6, %s2116_s11  ;;  %641 = vrot.lane.b32.xlu0 %v635_v6, %s2117_s4  ;;  %v1663_v9 = vpop.f32.mrb[3].mxu0  ;;  %v650_v10 = vpack.c.bf16 %v635_v6, %v635_v6 }
 0x184   : > { %655 = vst.msk [vmem:[#allocation2] sm:$0xf] %vm654_vm2, %v650_v10 }
 0x186   : > { %644 = vrot.lane.b32.xlu0 %v635_v6, %s2118_s6  ;;  %671 = vrot.lane.b32.xlu1 %v650_v10, %s2119_s3 }
 0x18a   : > { %687 = vrot.lane.b32.xlu1 %v650_v10, %s2120_s19 }
 0x1f4   : > { %v648_v11 = vpop.permute.xlu1 %647  ;;  %v642_v12 = vpop.permute.xlu0 %641 }
 0x1f5   : > { %v653_v13 = vpack.c.bf16 %v648_v11, %v648_v11  ;;  %v651_v14 = vpack.c.bf16 %v642_v12, %v642_v12 }
 0x1f7   : > { %658 = vst.msk [vmem:[#allocation2 + $0xc] sm:$0xf] %vm654_vm2, %v653_v13  ;;  %656 = vst.msk [vmem:[#allocation2 + $0x4] sm:$0xf] %vm654_vm2, %v651_v14  ;;  %673 = vrot.lane.b32.xlu0 %v651_v14, %s2119_s3 }
 0x1f8   : > { %v645_v15 = vpop.permute.xlu0 %644  ;;  %v672_v16 = vpop.permute.xlu1 %671 }
 0x1f9   : > { %v652_v17 = vpack.c.bf16 %v645_v15, %v645_v15  ;;  %683 = vst.msk [vmem:[#allocation3] sm:$0xf] %vm654_vm2, %v672_v16 }
 0x1fb   : > { %657 = vst.msk [vmem:[#allocation2 + $0x8] sm:$0xf] %vm654_vm2, %v652_v17  ;;  %677 = vrot.lane.b32.xlu0 %v653_v13, %s2119_s3  ;;  %675 = vrot.lane.b32.xlu1 %v652_v17, %s2119_s3 }
 0x1fc   : > { %v688_v18 = vpop.permute.xlu1 %687 }
 0x1fd   : > { %699 = vst.msk [vmem:[#allocation4] sm:$0xf] %vm654_vm2, %v688_v18 }
 0x1ff   : > { %689 = vrot.lane.b32.xlu0 %v651_v14, %s2120_s19  ;;  %691 = vrot.lane.b32.xlu1 %v652_v17, %s2120_s19 }
 0x203   : > { %693 = vrot.lane.b32.xlu0 %v653_v13, %s2120_s19 }
 0x269   : > { %v674_v19 = vpop.permute.xlu0 %673 }
 0x26a   : > { %684 = vst.msk [vmem:[#allocation3 + $0x4] sm:$0xf] %vm654_vm2, %v674_v19 }
 0x26d   : > { %v678_v20 = vpop.permute.xlu0 %677  ;;  %v676_v21 = vpop.permute.xlu1 %675 }
 0x26e   : > { %686 = vst.msk [vmem:[#allocation3 + $0xc] sm:$0xf] %vm654_vm2, %v678_v20  ;;  %685 = vst.msk [vmem:[#allocation3 + $0x8] sm:$0xf] %vm654_vm2, %v676_v21 }
 0x271   : > { %v690_v22 = vpop.permute.xlu0 %689  ;;  %v692_v23 = vpop.permute.xlu1 %691 }
 0x272   : > { %700 = vst.msk [vmem:[#allocation4 + $0x4] sm:$0xf] %vm654_vm2, %v690_v22  ;;  %701 = vst.msk [vmem:[#allocation4 + $0x8] sm:$0xf] %vm654_vm2, %v692_v23 }
 0x275   : > { %v694_v24 = vpop.permute.xlu0 %693 }
 0x276   : > { %702 = vst.msk [vmem:[#allocation4 + $0xc] sm:$0xf] %vm654_vm2, %v694_v24 }
 0x277 PF: > { %v708_v25 = vld [vmem:[#allocation3] sm:$0xf]  ;;  %vm712_vm3 = vcmask 64512   ;;  %v709_v26 = vld [vmem:[#allocation3 + $0x4] sm:$0xf]  ;;  %v2121_v27 = vmov 0.0   ;;  %v898_v40 = vlaneseq }
 0x278   : > { %1664 = vmatprep.subr.bf16.mxu0 %v2121_v27  ;;  %1670 = vmatprep.subr.bf16.mxu1 %v2121_v27  ;;  %v717_v28 = vsel %vm712_vm3, %v708_v25, 0  ;;  %v763_v29 = vsel %vm712_vm3, %v709_v26, 0  ;;  %vm2122_vm4 = vmmov 0   ;;  %v710_v30 = vld [vmem:[#allocation3 + $0x8] sm:$0xf]  ;;  %v2123_v33 = vmov 0  }
 0x279   : > { %1665 = vmatpush3.bf16.xpose.msra.mxu0 %v717_v28  ;;  %1671 = vmatpush3.bf16.xpose.msra.mxu1 %v763_v29  ;;  %v711_v31 = vld [vmem:[#allocation3 + $0xc] sm:$0xf]  ;;  %v1605_v32 = vld [vmem:[%s556_s17] ss:$0 sm:$0xff]  ;;  %v705_v35 = vld [vmem:[#allocation2 + $0x4] sm:$0xf] }
 0x27a   : > { %1666 = vmatprep.mubr.msk.bf16.mxu0 %vm2122_vm4, %v2121_v27  ;;  %1672 = vmatprep.mubr.msk.bf16.mxu1 %vm2122_vm4, %v2121_v27  ;;  %v704_v34 = vld [vmem:[#allocation2] sm:$0xf]  ;;  %v809_v36 = vsel %vm712_vm3, %v710_v30, 0  ;;  %v855_v37 = vsel %vm712_vm3, %v711_v31, 0  ;;  %v706_v38 = vld [vmem:[#allocation2 + $0x8] sm:$0xf] }
 0x27b   : > { %1676 = vmatprep.subr.bf16.mxu0 %v2121_v27  ;;  %1682 = vmatprep.subr.bf16.mxu1 %v2121_v27  ;;  %v707_v39 = vld [vmem:[#allocation2 + $0xc] sm:$0xf]  ;;  %v899_v41 = vshrl.u32 %v898_v40, 7  ;;  %v901_v42 = vand.u32 127, %v898_v40  ;;  %v976_v26 = vld [vmem:[#allocation4] sm:$0xf] }
 0x27c   : > { %1860 = vset.pattern.permute.xlu0 %v2123_v33  ;;  %v902_v43 = vld [vmem:[%s2452_s15] sm:$0xff]  ;;  %vm983_vm10 = vcmask 1043456   ;;  %vm971_vm11 = vcmask 60416   ;;  %s2749_s15 = scalar_lea.vmem [#allocation11], %s2459_s24  ;;  %s2124_s17 = smov 8   ;;  %vm1181_vm12 = vcmask 130048  }
 0x27d   : > { %909 = vperm.xlu0 %1860, %v1605_v32   ;;  %vm913_vm5 = vcmp.eq.s32.totalorder %v899_v41, 0  ;;  %vm914_vm6 = vcmp.eq.s32.totalorder %v901_v42, 0  ;;  %v985_v28 = vsel %vm983_vm10, %v976_v26, 0  ;;  %v977_v29 = vld [vmem:[#allocation4 + $0x4] sm:$0xf]  ;;  %s2750_s21 = smov %s2749_s15  ;;  %s2126_s24 = smov 24  }
 0x27e   : > { %vm915_vm7 = vmor %vm913_vm5, %vm914_vm6  ;;  %v1031_v30 = vsel %vm983_vm10, %v977_v29, 0  ;;  %v979_v41 = vld [vmem:[#allocation4 + $0xc] sm:$0xf]  ;;  %vm1184_vm13 = vcmask 195584   ;;  %vm1204_vm14 = vcmask 261120   ;;  %p1613_p1 = scmp.ne.s32.totalorder %s2091_s27, 2 }
 0x27f   : > { %s2751_s10 = sld [smem:[#allocation30_spill]] (!%p1613_p1)  ;;  %vm2128_vm15 = vmmov (!%p1613_p1), 0   ;;  %s2752_s3 = sld [smem:[#allocation29_spill]] (!%p1613_p1) }
 0x280   : > { %1667 = vmatmul.mubr.msk.bf16.vlgmr.msra.gmra.mrb[0].mxu0 %vm712_vm3, %v704_v34  ;;  %1673 = vmatmul.mubr.msk.bf16.vlgmr.msra.gmra.mrb[0].mxu1 %vm712_vm3, %v705_v35  ;;  %v978_v35 = vld [vmem:[#allocation4 + $0x8] sm:$0xf]  ;;  %s2753_s9 = sld [smem:[#allocation31_spill]] (!%p1613_p1) }
 0x281   : > { %1677 = vmatpush3.bf16.xpose.msra.mxu0 %v809_v36  ;;  %1683 = vmatpush3.bf16.xpose.msra.mxu1 %v855_v37 }
 0x282   : > { %1678 = vmatprep.mubr.msk.bf16.mxu0 %vm2122_vm4, %v2121_v27  ;;  %1684 = vmatprep.mubr.msk.bf16.mxu1 %vm2122_vm4, %v2121_v27 }
 0x283   : > { %1688 = vmatprep.subr.bf16.mxu0 %v2121_v27  ;;  %1694 = vmatprep.subr.bf16.mxu1 %v2121_v27 }
 0x288   : > { %1679 = vmatmul.mubr.msk.bf16.vlgmr.msra.gmra.mrb[4].mxu0 %vm712_vm3, %v706_v38  ;;  %1685 = vmatmul.mubr.msk.bf16.vlgmr.msra.gmra.mrb[4].mxu1 %vm712_vm3, %v707_v39  ;;  %v1077_v39 = vsel %vm983_vm10, %v978_v35, 0 }
 0x289   : > { %1690 = vmatprep.mubr.msk.bf16.mxu0 %vm2122_vm4, %v2121_v27  ;;  %1696 = vmatprep.mubr.msk.bf16.mxu1 %vm2122_vm4, %v2121_v27 }
 0x28a   : > { %1689 = vmatpush3.bf16.msra.mxu0 %v985_v28  ;;  %1695 = vmatpush3.bf16.msra.mxu1 %v1031_v30 }
 0x28b   : > { %1700 = vmatprep.subr.bf16.mxu0 %v2121_v27  ;;  %1706 = vmatprep.subr.bf16.mxu1 %v2121_v27 }
 0x2fc   : > { %v910_v44 = vpop.permute.xlu0 %909 }
 0x2fd   : > { %vm912_vm8 = vcmp.lt.f32.partialorder %v902_v43, %v910_v44  ;;  %v1123_v44 = vsel %vm983_vm10, %v979_v41, 0 }
 0x2fe   : > { %vm2539_vm9 = vmor %vm912_vm8, %vm915_vm7 }
 0x353   : > { %v753_v46 = vpop.f32.mrb[0].mxu0  ;;  %v799_v47 = vpop.f32.mrb[0].mxu1 }
 0x354   : > { %v919_v48 = vsel %vm2539_vm9, %v753_v46, -1e+12  ;;  %v920_v49 = vsel %vm2539_vm9, %v799_v47, -1e+12  ;;  %v1668_v50 = vpop.f32.mrb[1].mxu0  ;;  %v1674_v51 = vpop.f32.mrb[1].mxu1 }
 0x355   : > { %v756_v52 = vpop.f32.mrb[2].mxu0  ;;  %v926_v53 = vsel %vm712_vm3, %v920_v49, -inf  ;;  %v923_v54 = vsel %vm712_vm3, %v919_v48, -inf  ;;  %v802_v55 = vpop.f32.mrb[2].mxu1  ;;  %v1861_v51 = vld [vmem:[%s2749_s15] sm:$0xff]   ;;  %s2754_s15 = sld [smem:[#allocation32_spill]] (!%p1613_p1) }
 0x356   : > { %927 = vmax.xlane.f32.xlu1 %v926_v53  ;;  %924 = vmax.xlane.f32.xlu0 %v923_v54  ;;  %v1669_v56 = vpop.f32.mrb[3].mxu0  ;;  %v1675_v57 = vpop.f32.mrb[3].mxu1  ;;  %v1862_v52 = vld [vmem:[%s2750_s21 + $0x8] sm:$0xff]  }
 0x35b   : > { %v845_v58 = vpop.f32.mrb[4].mxu0  ;;  %v891_v59 = vpop.f32.mrb[4].mxu1 }
 0x35c   : > { %v921_v60 = vsel %vm2539_vm9, %v845_v58, -1e+12  ;;  %v1680_v61 = vpop.f32.mrb[5].mxu0  ;;  %v1686_v62 = vpop.f32.mrb[5].mxu1  ;;  %v922_v2 = vsel %vm2539_vm9, %v891_v59, -1e+12 }
 0x35d   : > { %v848_v63 = vpop.f32.mrb[6].mxu0  ;;  %v929_v0 = vsel %vm712_vm3, %v921_v60, -inf  ;;  %v894_v1 = vpop.f32.mrb[6].mxu1  ;;  %v932_v5 = vsel %vm712_vm3, %v922_v2, -inf }
 0x35e   : > { %930 = vmax.xlane.f32.xlu1 %v929_v0  ;;  %v1681_v3 = vpop.f32.mrb[7].mxu0  ;;  %v1687_v4 = vpop.f32.mrb[7].mxu1 }
 0x362   : > { %933 = vmax.xlane.f32.xlu1 %v932_v5 }
 0x3e3   : > { %v928_v6 = vpop.xlane.xlu1 %927  ;;  %v925_v7 = vpop.xlane.xlu0 %924 }
 0x3e4   : > { %v936_v8 = vsub.f32 %v920_v49, %v928_v6  ;;  %v935_v9 = vsub.f32 %v919_v48, %v925_v7 }
 0x3e6   : > { %v939_v10 = vmul.f32 1.442695, %v935_v9  ;;  %v941_v11 = vmul.f32 1.442695, %v936_v8 }
 0x3e8   : > { %1863 = vpow2.f32 %v939_v10 }
 0x3e9   : > { %1865 = vpow2.f32 %v941_v11 }
 0x3eb   : > { %v931_v12 = vpop.xlane.xlu1 %930 }
 0x3ec   : > { %v937_v13 = vsub.f32 %v921_v60, %v931_v12 }
 0x3ee   : > { %v943_v14 = vmul.f32 1.442695, %v937_v13 }
 0x3ef   : > { %v934_v15 = vpop.xlane.xlu1 %933 }
 0x3f0   : > { %1867 = vpow2.f32 %v943_v14  ;;  %v938_v16 = vsub.f32 %v922_v2, %v934_v15  ;;  %v1187_v14 = vld [vmem:[#allocation5] sm:$0xff] }
 0x3f2   : > { %v945_v17 = vmul.f32 1.442695, %v938_v16  ;;  %v1864_v18 = vpop.eup %1863 }
 0x3f3   : > { %v947_v19 = vsel %vm712_vm3, %v1864_v18, 0.0  ;;  %v1866_v20 = vpop.eup %1865 }
 0x3f4   : > { %1869 = vpow2.f32 %v945_v17  ;;  %948 = vadd.xlane.f32.xlu1 %v947_v19  ;;  %v950_v21 = vsel %vm712_vm3, %v1866_v20, 0.0 }
 0x3f8   : > { %951 = vadd.xlane.f32.xlu1 %v950_v21  ;;  %v2127_v21 = vmov (!%p1613_p1), 0.0  }
 0x3fa   : > { %v1868_v22 = vpop.eup %1867 }
 0x3fb   : > { %v953_v23 = vsel %vm712_vm3, %v1868_v22, 0.0 }
 0x3fc   : > { %954 = vadd.xlane.f32.xlu1 %v953_v23 }
 0x3fe   : > { %v1870_v24 = vpop.eup %1869 }
 0x3ff   : > { %v956_v25 = vsel %vm712_vm3, %v1870_v24, 0.0 }
 0x400   : > { %957 = vadd.xlane.f32.xlu1 %v956_v25 }
 0x481   : > { %v949_v31 = vpop.xlane.xlu1 %948 }
 0x482   : > { %1871 = vrcp.f32 %v949_v31 }
 0x485   : > { %v952_v32 = vpop.xlane.xlu1 %951 }
 0x486   : > { %1873 = vrcp.f32 %v952_v32 }
 0x489   : > { %v955_v33 = vpop.xlane.xlu1 %954 }
 0x48a   : > { %1875 = vrcp.f32 %v955_v33  ;;  %v1336_v33 = vld [vmem:[%s2444_s0] sm:$0xf] (!%p1613_p1) }
 0x48b   : > { %v1337_v35 = vunpack.c.l.bf16 (!%p1613_p1), %v1336_v33 }
 0x48c   : > { %v1872_v34 = vpop.eup %1871 }
 0x48d   : > { %v963_v36 = vmul.f32 %v1872_v34, %v1864_v18  ;;  %v958_v37 = vpop.xlane.xlu1 %957  ;;  %v1616_v34 = vld [vmem:[%s2753_s9] ss:$0 sm:$0xff] (!%p1613_p1) }
 0x48e   : > { %1877 = vrcp.f32 %v958_v37 }
 0x48f   : > { %v967_v38 = vpack.c.bf16 %v963_v36, %v963_v36 }
 0x490   : > { %v1874_v40 = vpop.eup %1873 }
 0x491   : > { %v964_v42 = vmul.f32 %v1874_v40, %v1866_v20  ;;  %972 = vst.msk [vmem:[%s2480_s7] sm:$0xf] %vm971_vm11, %v967_v38  ;;  %1691 = vmatmul.mubr.msk.bf16.vlgmr.msra.gmra.mrb[8].mxu0 %vm712_vm3, %v967_v38  ;;  %v1879_v20 = vld [vmem:[%s2751_s10] sm:$0xff] (!%p1613_p1)  }
 0x492   : > { %1701 = vmatpush3.bf16.msra.mxu0 %v1077_v39  ;;  %1702 = vmatprep.mubr.msk.bf16.mxu0 %vm2122_vm4, %v2121_v27 }
 0x493   : > { %v968_v43 = vpack.c.bf16 %v964_v42, %v964_v42  ;;  %1712 = vmatprep.subr.bf16.mxu0 %v2121_v27 }
 0x494   : > { %v1876_v45 = vpop.eup %1875 }
 0x495   : > { %v965_v46 = vmul.f32 %v1876_v45, %v1868_v22  ;;  %973 = vst.msk [vmem:[%s2480_s7 + $0x4] sm:$0xf] %vm971_vm11, %v968_v43  ;;  %1697 = vmatmul.mubr.msk.bf16.vlgmr.msra.gmra.mrb[8].mxu1 %vm712_vm3, %v968_v43  ;;  %v1880_v22 = vld [vmem:[%s2751_s10 + $0x8] sm:$0xff] (!%p1613_p1)  }
 0x496   : > { %1707 = vmatpush3.bf16.msra.mxu1 %v1123_v44  ;;  %1708 = vmatprep.mubr.msk.bf16.mxu1 %vm2122_vm4, %v2121_v27 }
 0x497   : > { %v969_v47 = vpack.c.bf16 %v965_v46, %v965_v46 }
 0x498   : > { %v1878_v48 = vpop.eup %1877 }
 0x499   : > { %v966_v49 = vmul.f32 %v1878_v48, %v1870_v24  ;;  %974 = vst.msk [vmem:[%s2480_s7 + $0x8] sm:$0xf] %vm971_vm11, %v969_v47  ;;  %1703 = vmatmul.mubr.msk.bf16.vlgmr.msra.gmra.mrb[12].mxu0 %vm712_vm3, %v969_v47  ;;  %v1614_v24 = vld [vmem:[%s2752_s3] ss:$0 sm:$0xff] (!%p1613_p1) }
 0x49a   : > { %1716 = vmatprep.mubr.msk.bf16.mxu0 %vm2122_vm4, %v2121_v27  ;;  %1713 = vmatpush3.bf16.msra.mxu0 %v1861_v51 }
 0x49b   : > { %v970_v50 = vpack.c.bf16 %v966_v49, %v966_v49  ;;  %1714 = vmatprep.subr.bf16.mxu0 %v2121_v27 }
 0x49d   : > { %975 = vst.msk [vmem:[%s2480_s7 + $0xc] sm:$0xf] %vm971_vm11, %v970_v50  ;;  %1709 = vmatmul.mubr.msk.bf16.vlgmr.msra.gmra.mrb[12].mxu1 %vm712_vm3, %v970_v50  ;;  %s2125_s7 = smov 16  }
 0x49e   : > { %1715 = vmatpush3.bf16.msra.mxu0 %v1862_v52  ;;  %v1620_v52 = vld [vmem:[%s2754_s15] ss:$0 sm:$0xff] (!%p1613_p1) }
 0x49f   : > { %1720 = vmatprep.subr.bf16.mxu0 (!%p1613_p1), %v2127_v21 }
 0x564   : > { %v1021_v53 = vpop.f32.mrb[8].mxu0 }
 0x565   : > { %v1692_v54 = vpop.f32.mrb[9].mxu0  ;;  %v1165_v8 = vpack.c.bf16 %v1021_v53, %v1021_v53 }
 0x566   : > { %v1024_v55 = vpop.f32.mrb[10].mxu0 }
 0x567   : > { %v1693_v56 = vpop.f32.mrb[11].mxu0 }
 0x568   : > { %v1067_v57 = vpop.f32.mrb[8].mxu1 }
 0x569   : > { %v1166_v58 = vpack.c.bf16 %v1067_v57, %v1067_v57  ;;  %v1698_v59 = vpop.f32.mrb[9].mxu1 }
 0x56a   : > { %v1070_v60 = vpop.f32.mrb[10].mxu1 }
 0x56b   : > { %1170 = vrot.lane.b32.xlu1 %v1166_v58, %s2124_s17  ;;  %v1699_v61 = vpop.f32.mrb[11].mxu1 }
 0x56c   : > { %v1113_v62 = vpop.f32.mrb[12].mxu0 }
 0x56d   : > { %v1167_v63 = vpack.c.bf16 %v1113_v62, %v1113_v62  ;;  %v1704_v0 = vpop.f32.mrb[13].mxu0 }
 0x56e   : > { %v1116_v1 = vpop.f32.mrb[14].mxu0 }
 0x56f   : > { %1173 = vrot.lane.b32.xlu0 %v1167_v63, %s2125_s7  ;;  %v1705_v27 = vpop.f32.mrb[15].mxu0  ;;  %s2755_s7 = sld [smem:[#allocation33_spill]] (!%p1613_p1) }
 0x570   : > { %v1159_v2 = vpop.f32.mrb[12].mxu1 }
 0x571   : > { %v1168_v3 = vpack.c.bf16 %v1159_v2, %v1159_v2  ;;  %v1710_v4 = vpop.f32.mrb[13].mxu1 }
 0x572   : > { %v1162_v5 = vpop.f32.mrb[14].mxu1 }
 0x573   : > { %1176 = vrot.lane.b32.xlu1 %v1168_v3, %s2126_s24  ;;  %v1711_v6 = vpop.f32.mrb[15].mxu1 }
 0x575   : > { %v1621_v54 = vld [vmem:[%s2755_s7] ss:$0 sm:$0xff] (!%p1613_p1) }
 0x5dd   : > { %v1171_v7 = vpop.permute.xlu1 %1170 }
 0x5de   : > { %v1180_v10 = vsel %vm712_vm3, %v1165_v8, %v1171_v7 }
 0x5e1   : > { %v1174_v9 = vpop.permute.xlu0 %1173 }
 0x5e2   : > { %v1183_v11 = vsel %vm1181_vm12, %v1180_v10, %v1174_v9 }
 0x5e5   : > { %v1177_v12 = vpop.permute.xlu1 %1176 }
 0x5e6   : > { %v1186_v13 = vsel %vm1184_vm13, %v1183_v11, %v1177_v12 }
 0x5e7   : > { %1717 = vmatmul.mubr.msk.bf16.vlgmr.msra.gmra.mrb[16].mxu0 %vm1204_vm14, %v1186_v13 }
 0x5e8   : > { %1721 = vmatpush3.bf16.msra.mxu0 (!%p1613_p1), %v1879_v20  ;;  %1724 = vmatprep.mubr.msk.bf16.mxu0 (!%p1613_p1), %vm2128_vm15, %v2127_v21 }
 0x5e9   : > { %1722 = vmatprep.subr.bf16.mxu0 (!%p1613_p1), %v2127_v21 }
 0x5ec   : > { %1723 = vmatpush3.bf16.msra.mxu0 (!%p1613_p1), %v1880_v22 }
 0x6b7   : > { %1252 = sbr.rel (%p1613_p1) target bundleno = 2295 (0x8f7), region = 84 }
 0x6ba   : > { %v1241_v15 = vpop.f32.mrb[16].mxu0 }
 0x6bb   : > { %v1247_v16 = vadd.f32 %v1241_v15, %v1187_v14  ;;  %v1718_v17 = vpop.f32.mrb[17].mxu0 }
 0x6bc   : > { %v1244_v18 = vpop.f32.mrb[18].mxu0 }
 0x6bd   : > { %1248 = vst.msk [vmem:[#allocation5] sm:$0xff] %vm1204_vm14, %v1247_v16  ;;  %v1719_v19 = vpop.f32.mrb[19].mxu0 }
 0x6c4   : > { %v1253_v23 = vld [vmem:[#allocation5] sm:$0xff] }
 0x6c5   : > { %v1261_v25 = vadd.f32 %v1614_v24, %v1253_v23 }
 0x6c7   : > { %v1615_v26 = vmul.f32 -1.442695, %v1261_v25 }
 0x6c9   : > { %1881 = vpow2.f32 %v1615_v26 }
 0x6d3   : > { %v1882_v28 = vpop.eup %1881 }
 0x6d4   : > { %v1265_v29 = vadd.f32 1.0, %v1882_v28 }
 0x6d6   : > { %1883 = vrcp.f32 %v1265_v29 }
 0x6e0   : > { %v1884_v30 = vpop.eup %1883 }
 0x6e1   : > { %v1268_v31 = vmul.f32 %v1884_v30, %v1261_v25 }
 0x6e3   : > { %v1269_v32 = vpack.c.bf16 %v1268_v31, %v1268_v31 }
 0x6e5   : > { %1725 = vmatmul.mubr.msk.bf16.vlgmr.msra.gmra.mrb[0].mxu0 %vm1204_vm14, %v1269_v32 }
 0x7b8   : > { %v1330_v36 = vpop.f32.mrb[0].mxu0 }
 0x7b9   : > { %v1331_v37 = vadd.f32 %v1616_v34, %v1330_v36  ;;  %v1726_v38 = vpop.f32.mrb[1].mxu0 }
 0x7ba   : > { %v1333_v39 = vpop.f32.mrb[2].mxu0 }
 0x7bb   : > { %v1727_v40 = vpop.f32.mrb[3].mxu0  ;;  %v1338_v41 = vadd.f32 %v1337_v35, %v1331_v37 }
 0x7bd   : > { %v1339_v42 = vsel %vm1204_vm14, %v1338_v41, 0.0 }
 0x7be   : > { %1340 = vadd.xlane.f32.xlu0 %v1339_v42 }
 0x84b   : > { %v1341_v43 = vpop.xlane.xlu0 %1340 }
 0x84c   : > { %v1343_v44 = vmul.f32 0.03125, %v1341_v43 }
 0x84e   : > { %v1344_v45 = vsub.f32 %v1338_v41, %v1343_v44 }
 0x850   : > { %v1345_v46 = vmul.f32 %v1344_v45, %v1344_v45 }
 0x852   : > { %v1346_v47 = vsel %vm1204_vm14, %v1345_v46, 0.0 }
 0x853   : > { %1347 = vadd.xlane.f32.xlu0 %v1346_v47 }
 0x8e0   : > { %v1348_v48 = vpop.xlane.xlu0 %1347 }
 0x8e1   : > { %v1349_v49 = vmul.f32 0.03125, %v1348_v48 }
 0x8e3   : > { %v1350_v50 = vadd.f32 1e-06, %v1349_v49 }
 0x8e5   : > { %1885 = vrsqrt.f32 %v1350_v50 }
 0x8ef   : > { %v1886_v51 = vpop.eup %1885 }
 0x8f0   : > { %v1352_v53 = vmul.f32 %v1886_v51, %v1344_v45 }
 0x8f2   : > { %v1360_v55 = vmul.f32 %v1620_v52, %v1352_v53 }
 0x8f4   : > { %v1368_v56 = vadd.f32 %v1621_v54, %v1360_v55 }
 0x8f6   : > { %1369 = vst.msk [vmem:[%s2482_s30] sm:$0xff] %vm1204_vm14, %v1368_v56 }
 0x8f7 PF: > { %s2756_s24 = sld [smem:[#allocation20_spill]]  ;;  %s1623_s1 = sshll.u32 %s2095_s28, 7 }
 0x8f8   : > { %s2757_s11 = sld [smem:[#allocation34_spill]]  ;;  %s1393_s6 = sshll.u32 %s2482_s30, 4  ;;  %s1394_s6 = int_to_ptr.vmem [resolvable:$true] %s1393_s6 }
 0x8f9   : > { %s1371_s3 = scalar_lea.sflag [#allocation8], %s2440_s20  ;;  %s1977_s27 = scalar_lea.vmem %s1394_s6, 128 }
 0x8fa   : > { %p1978_p0 = scmp.ne.s32.totalorder %s1394_s6, %s1977_s27  ;;  %s2129_s19 = smov [#allocation12]  }
 0x8fb   : > { %s1981_s9 = sshll.u32 %s2129_s19, 4  ;;  %s1982_s9 = int_to_ptr.vmem [resolvable:$false] %s1981_s9 }
 0x8fc   : > { %s1983_s0 = scalar_lea.vmem %s1982_s9, 256  ;;  %p1984_p10 = scmp.lt.s32.totalorder %s1394_s6, %s1982_s9 }
 0x8fd   : > { %p2758_p11 = scmp.ne.s32.totalorder %s2756_s24, 0  ;;  %p1985_p12 = scmp.lt.s32.totalorder %s1983_s0, %s1977_s27 }
 0x8fe   : > { %s2621_s4 = scalar_lea.hbm %s2757_s11, %s1623_s1 }
 0x8ff   : > { %p1979_p8 = pnand %p1978_p0, %p2758_p11  ;;  %p1986_p7 = por %p1985_p12, %p1984_p10 }
 0x901   : > { %p1980_p5 = pneg %p1979_p8 }
 0x903   : > { %p1987_p13 = pnand %p1986_p7, %p1980_p5 }
 0x905   : > { %1990 = shalt.err (!%p1987_p13)
}
 0x906   : > { %s1991_s28 = scalar_lea.hbm %s2621_s4, 128  ;;  %s1995_s14 = scalar_lea.hbm %s2757_s11, 256 }
 0x907   : > { %p1992_p9 = scmp.ne.s32.totalorder %s2621_s4, %s1991_s28  ;;  %p1996_p4 = scmp.lt.u32.totalorder %s2621_s4, %s2757_s11 }
 0x908   : > { %p1997_p3 = scmp.lt.u32.totalorder %s1995_s14, %s1991_s28  ;;  %p1999_p0 = scmp.lt.u32.totalorder %s1991_s28, %s2621_s4 }
 0x909   : > { %p1993_p6 = pnand %p1992_p9, %p2758_p11 }
 0x90a   : > { %p1998_p1 = por %p1997_p3, %p1996_p4 }
 0x90b   : > { %p1994_p2 = pneg %p1993_p6 }
 0x90c   : > { %p2000_p8 = por %p1999_p0, %p1998_p1 }
 0x90e   : > { %p2001_p5 = pnand %p2000_p8, %p1994_p2 }
 0x910   : > { %2004 = shalt.err (!%p2001_p5)
}
 0x911   : > { %1735 = dma.vmem_to_hbm [thread:$0]  (%p2758_p11), %s1394_s6, 128, %s2621_s4, %s1371_s3  }
 0x912 PF: > { %s2759_s17 = sld [smem:[#allocation19_spill]]  ;;  %s2760_s7 = sld [smem:[#allocation17_spill]] }
 0x913   : > { %s2761_s1 = sld [smem:[#allocation21_spill]] }
 0x918   : > { %p1752_p10 = scmp.ge.s32.totalorder %s2759_s17, 2  ;;  %s1409_s5 = sand.u32 1, %s2760_s7  }
 0x919   : > { %p2762_p12 = scmp.ne.s32.totalorder %s2761_s1, 0  ;;  %s1410_s18 = scalar_lea.sflag [#allocation8], %s1409_s5 }
 0x91b   : > { %p1748_p7 = pnand %p1752_p10, %p2762_p12 }
 0x91d   : > { %2062 = dma.done.wait (!%p1748_p7), %s1410_s18, 128  }
 0x91e   : > { %2064 = vsyncadd (!%p1748_p7), %s1410_s18, 4294967168  ;;  %s32_s19 = sadd.s32 1, %s2759_s17   ;;  %s2763_s28 = sld [smem:[#allocation18_spill]] }
 0x91f   : > { %p29_p13 = scmp.ge.s32.totalorder %s32_s19, 8   ;;  %s2764_s4 = sld [smem:[#allocation22_spill]] }
 0x920   : > { %s2765_s30 = sld [smem:[#allocation23_spill]]  ;;  %s2766_s21 = smov %s2071_s22 }
 0x921   : > { %s2767_s22 = smov %s2075_s23  ;;  %s2768_s23 = smov %s2394_s13 }
 0x922   : > { %s2769_s24 = smov %s2083_s25  ;;  %s2770_s25 = smov %s2087_s26 }
 0x923   : > { %s2771_s26 = smov %s2435_s16  ;;  %s2772_s27 = smov %s2099_s29 }
 0x924   : > { %s2774_s13 = smov %s32_s19  ;;  %31 = sbr.rel (!%p29_p13) target bundleno = 23 (0x17), region = 156 }
 0x925   : > { %s2773_s29 = smov %s2764_s4 }
 0x92b   :  { %1427 = vsyncpa [#allocation7], 1 }
 0x92c   :  { %1429 = vsyncpa [#allocation7 + $0x1], 1 }
 0x92d   :  { %1430 = vsyncpa [#allocation10], 1 }
 0x92e   :  { %1432 = vsyncpa [#allocation10 + $0x1], 1 }
 0x92f   :  { %1433 = vsyncpa [#allocation8], 1 }
 0x930   :  { %1435 = vsyncpa [#allocation8 + $0x1], 1 }

</bundles_post_ra>
